<compile_context>
chip_gen: v7x
topology: tpu7x:2x2x1
jax: 0.10.0
libtpu: 0.0.40
codegen_flags: <defaults>
</compile_context>

<pallas_src>
import numpy as np
import jax
import jax.numpy as jnp
from jax.experimental import pallas as pl
from jax.experimental.pallas import tpu as pltpu

# --- CONFIG values that define the forward pass -----------------------------
IMG_SIZE = (28, 28)
DIMS = 1 * IMG_SIZE[0] * IMG_SIZE[1]     # 784
SPLIT = DIMS // 2                        # 392 (split_len1 == split_len2)
N_COND = 10                              # one-hot condition width
WIDTH = 64                               # CONFIG.internal_width
N_BLOCKS = 20                            # CONFIG.n_blocks
CLAMP = 1.0                              # CONFIG.clamping
INIT_SCALE = 0.03                        # CONFIG.init_scale
BATCH = 2


# --- in-kernel arctan (Cephes atanf scheme, float32 accurate) ----------------
def _atan_f32(x):
    """arctan built only from mul/add/div/where/compare (safe Mosaic ops).
    Matches jnp.arctan to ~1e-7; atan(0) == 0 exactly (needed for the folded
    identity coordinates)."""
    tan3pi8 = 2.414213562373095
    tanpi8 = 0.4142135623730951
    pio2 = 1.5707963267948966
    pio4 = 0.7853981633974483
    sgn = jnp.where(x < 0.0, -1.0, 1.0)
    ax = jnp.where(x < 0.0, -x, x)
    big = ax > tan3pi8
    mid = jnp.logical_and(ax > tanpi8, jnp.logical_not(big))
    xr = jnp.where(big, -1.0 / ax, jnp.where(mid, (ax - 1.0) / (ax + 1.0), ax))
    yoff = jnp.where(big, pio2, jnp.where(mid, pio4, 0.0))
    z = xr * xr
    p = ((((8.05374449538e-2 * z - 1.38776856032e-1) * z
           + 1.99777106478e-1) * z - 3.33329491539e-1) * z * xr + xr)
    return sgn * (yoff + p)


# --- fused Pallas kernel: whole 20-block conditional GLOW chain --------------
def _fused_cinn_kernel(x_ref, hb_ref, bst_ref, wx_ref, wst_ref,
                       z_ref, lj_ref, state, ljacc):
    """One grid step == one (PermuteRandom + GLOWCouplingBlock).

    The permutation is pre-folded into the weights: wx rows are scattered to
    the frame positions of the subnet's input, ws/wt columns (and bs/bt) to
    the frame positions of the half being updated, zeros elsewhere.  On the
    untouched half s == t == 0 exactly, so  v <- exp(0)*v + 0  is the exact
    identity and the log-det contribution is exactly 0.
    """
    k = pl.program_id(0)

    @pl.when(k == 0)
    def _init():
        state[...] = x_ref[...]
        ljacc[...] = jnp.zeros_like(ljacc)

    def coupling(v, s_idx):
        # subnet = QuantStub -> Linear(in+10, 64) -> ReLU -> Linear(64, 2*out)
        #          -> DeQuantStub  (quant stubs are identity in float forward)
        wx = wx_ref[0, s_idx].astype(jnp.float32)             # (784, 64)
        h = jnp.dot(v, wx, preferred_element_type=jnp.float32) + hb_ref[0, s_idx]
        h = jnp.maximum(h, 0.0)                               # fuco1 + relu1
        ws = wst_ref[0, 2 * s_idx + 0].astype(jnp.float32)    # (64, 784)
        wt = wst_ref[0, 2 * s_idx + 1].astype(jnp.float32)    # (64, 784)
        s_f = (jnp.dot(h, ws, preferred_element_type=jnp.float32)
               + bst_ref[0, 2 * s_idx + 0])
        t_f = (jnp.dot(h, wt, preferred_element_type=jnp.float32)
               + bst_ref[0, 2 * s_idx + 1])
        log_e = CLAMP * 0.636 * _atan_f32(s_f / CLAMP)        # FrEIA GLOW clamp
        return jnp.exp(log_e) * v + t_f, log_e

    v = state[...]
    v, le2 = coupling(v, 1)        # subnet2(x2, c): writes the y1 half
    v, le1 = coupling(v, 0)        # subnet1(y1, c): writes the y2 half
    state[...] = v
    ljacc[...] += (jnp.sum(le1, axis=1, keepdims=True)
                   + jnp.sum(le2, axis=1, keepdims=True))

    @pl.when(k == pl.num_programs(0) - 1)
    def _finalize():
        z_ref[...] = state[...]
        lj_ref[...] = ljacc[...]


# --- full cINN forward: cinn(x, c=one_hot(label), jac=True) ------------------
def cinn_forward(x_img, label, params):
    B = x_img.shape[0]
    x0 = x_img.reshape(B, -1).astype(jnp.float32)              # Fm.Flatten (NCHW)
    # one-hot(label) @ Wc + b1  ==  Wc[label] + b1  (exact row lookup), folded
    # into one per-(block, subnet, sample) hidden bias computed outside.
    hb = jnp.take(params["wc"], label, axis=2) + params["bh"]  # (N, 2, B, 64) f32

    wx, wst, bst = params["wx"], params["wst"], params["bst"]
    flops = N_BLOCKS * 12 * B * DIMS * WIDTH
    transcendentals = N_BLOCKS * 4 * B * DIMS
    bytes_accessed = ((wx.size + wst.size) * 2 + (bst.size + hb.size) * 4
                      + (2 * B * DIMS + B) * 4)

    grid_spec = pltpu.PrefetchScalarGridSpec(
        num_scalar_prefetch=0,
        grid=(N_BLOCKS,),
        in_specs=[
            pl.BlockSpec((B, DIMS), lambda k: (0, 0)),                  # x (resident)
            pl.BlockSpec((1, 2, B, WIDTH), lambda k: (k, 0, 0, 0)),     # hidden bias
            pl.BlockSpec((1, 4, 1, DIMS), lambda k: (k, 0, 0, 0)),      # bs/bt (folded)
            pl.BlockSpec((1, 2, DIMS, WIDTH), lambda k: (k, 0, 0, 0)),  # Wx (bf16, folded)
            pl.BlockSpec((1, 4, WIDTH, DIMS), lambda k: (k, 0, 0, 0)),  # Ws/Wt (bf16, folded)
        ],
        out_specs=[
            pl.BlockSpec((B, DIMS), lambda k: (0, 0)),
            pl.BlockSpec((B, 1), lambda k: (0, 0)),
        ],
        scratch_shapes=[
            pltpu.VMEM((B, DIMS), jnp.float32),   # running state (VMEM-resident)
            pltpu.VMEM((B, 1), jnp.float32),      # running log-jacobian
        ],
    )
    v, lj = pl.pallas_call(
        _fused_cinn_kernel,
        out_shape=(jax.ShapeDtypeStruct((B, DIMS), jnp.float32),
                   jax.ShapeDtypeStruct((B, 1), jnp.float32)),
        grid_spec=grid_spec,
        compiler_params=pltpu.CompilerParams(dimension_semantics=("arbitrary",)),
        cost_estimate=pl.CostEstimate(flops=flops,
                                      transcendentals=transcendentals,
                                      bytes_accessed=bytes_accessed),
    )(x0, hb, bst, wx, wst)
    # undo the in-place coordinate bookkeeping of the folded permutations
    z = jnp.take(v, params["unscramble"], axis=1)
    return z, lj[:, 0]


# --- deterministic parameter construction + offline permutation folding ------
def _bf16_round(a):
    return np.asarray(jnp.asarray(a, jnp.float32).astype(jnp.bfloat16)
                      .astype(jnp.float32))


def init_params(key, perms_np):
    """init_scale * randn parameters (PyTorch Linear layout), then:
      * matmul weights rounded to bfloat16 (stored bf16 -> half the HBM traffic),
      * every block's PermuteRandom folded offline into zero-padded rows /
        columns of its subnet weights (gather-free kernel).
    Returns (kernel_params, reference_params)."""
    wx_f = np.zeros((N_BLOCKS, 2, DIMS, WIDTH), np.float32)
    wst_f = np.zeros((N_BLOCKS, 4, WIDTH, DIMS), np.float32)
    bst_f = np.zeros((N_BLOCKS, 4, 1, DIMS), np.float32)
    wc = np.zeros((N_BLOCKS, 2, N_COND, WIDTH), np.float32)
    bh = np.zeros((N_BLOCKS, 2, 1, WIDTH), np.float32)
    r_wx = np.zeros((N_BLOCKS, 2, SPLIT, WIDTH), np.float32)
    r_ws = np.zeros((N_BLOCKS, 2, WIDTH, SPLIT), np.float32)
    r_wt = np.zeros((N_BLOCKS, 2, WIDTH, SPLIT), np.float32)
    r_bs = np.zeros((N_BLOCKS, 2, 1, SPLIT), np.float32)
    r_bt = np.zeros((N_BLOCKS, 2, 1, SPLIT), np.float32)

    addr = np.arange(DIMS)                       # frame position of state[i]
    for k in range(N_BLOCKS):
        q1 = addr[perms_np[k, :SPLIT]]           # frame positions of x1 / y1
        q2 = addr[perms_np[k, SPLIT:]]           # frame positions of x2 / y2
        for s in range(2):                       # 0 = subnet1, 1 = subnet2
            key, k1, k2, k3, k4 = jax.random.split(key, 5)
            w1 = INIT_SCALE * np.asarray(
                jax.random.normal(k1, (WIDTH, SPLIT + N_COND), jnp.float32))
            b1 = INIT_SCALE * np.asarray(jax.random.normal(k2, (WIDTH,), jnp.float32))
            w2 = INIT_SCALE * np.asarray(
                jax.random.normal(k3, (2 * SPLIT, WIDTH), jnp.float32))
            b2 = INIT_SCALE * np.asarray(jax.random.normal(k4, (2 * SPLIT,), jnp.float32))

            wx_u = _bf16_round(w1[:, :SPLIT].T)              # (392, 64)
            ws_u = _bf16_round(w2[:SPLIT].T)                 # (64, 392)
            wt_u = _bf16_round(w2[SPLIT:].T)                 # (64, 392)
            wc[k, s] = w1[:, SPLIT:].T
            bh[k, s] = b1.reshape(1, WIDTH)
            r_wx[k, s], r_ws[k, s], r_wt[k, s] = wx_u, ws_u, wt_u
            r_bs[k, s] = b2[:SPLIT].reshape(1, SPLIT)
            r_bt[k, s] = b2[SPLIT:].reshape(1, SPLIT)

            qin = q1 if s == 0 else q2           # subnet input lives here
            qout = q2 if s == 0 else q1          # subnet (s, t) outputs act here
            wx_f[k, s, qin, :] = wx_u
            tmp = np.zeros((WIDTH, DIMS), np.float32); tmp[:, qout] = ws_u
            wst_f[k, 2 * s + 0] = tmp
            tmp = np.zeros((WIDTH, DIMS), np.float32); tmp[:, qout] = wt_u
            wst_f[k, 2 * s + 1] = tmp
            bst_f[k, 2 * s + 0, 0, qout] = b2[:SPLIT]
            bst_f[k, 2 * s + 1, 0, qout] = b2[SPLIT:]
        addr = addr[perms_np[k]]                 # compose permutations

    kernel_params = dict(
        wx=jnp.asarray(wx_f, jnp.bfloat16),
        wst=jnp.asarray(wst_f, jnp.bfloat16),
        bst=jnp.asarray(bst_f),
        wc=jnp.asarray(wc),
        bh=jnp.asarray(bh),
        unscramble=jnp.asarray(addr.astype(np.int32)),
    )
    ref_params = dict(wx=jnp.asarray(r_wx), ws=jnp.asarray(r_ws),
                      wt=jnp.asarray(r_wt), bs=jnp.asarray(r_bs),
                      bt=jnp.asarray(r_bt), wc=jnp.asarray(wc), bh=jnp.asarray(bh))
    return kernel_params, ref_params


# --- pure-JAX reference (same bf16-rounded weights, explicit permutations) ---
def reference_forward(x_img, label, p, perms_np):
    hp = jax.lax.Precision.HIGHEST
    B = x_img.shape[0]
    x = x_img.reshape(B, -1).astype(jnp.float32)
    c = jax.nn.one_hot(label, N_COND, dtype=jnp.float32)
    log_jac = jnp.zeros((B,), jnp.float32)
    for k in range(N_BLOCKS):
        xp = x[:, perms_np[k]]                               # Fm.PermuteRandom
        x1, x2 = xp[:, :SPLIT], xp[:, SPLIT:]

        def subnet(u, s):
            h = jnp.maximum(jnp.dot(u, p["wx"][k, s], precision=hp)
                            + jnp.dot(c, p["wc"][k, s], precision=hp)
                            + p["bh"][k, s], 0.0)
            return (jnp.dot(h, p["ws"][k, s], precision=hp) + p["bs"][k, s],
                    jnp.dot(h, p["wt"][k, s], precision=hp) + p["bt"][k, s])

        s2, t2 = subnet(x2, 1)
        le2 = CLAMP * 0.636 * jnp.arctan(s2 / CLAMP)
        y1 = jnp.exp(le2) * x1 + t2
        s1, t1 = subnet(y1, 0)
        le1 = CLAMP * 0.636 * jnp.arctan(s1 / CLAMP)
        y2 = jnp.exp(le1) * x2 + t1
        x = jnp.concatenate([y1, y2], axis=1)
        log_jac = log_jac + jnp.sum(le1, axis=1) + jnp.sum(le2, axis=1)
    return x, log_jac


if __name__ == "__main__":
    root = jax.random.PRNGKey(0)
    kparam, kx, klabel = jax.random.split(root, 3)

    # FrEIA PermuteRandom(seed=k): np.random permutation of 784 with seed k
    perms_np = np.stack([np.random.RandomState(k).permutation(DIMS)
                         for k in range(N_BLOCKS)])

    params, ref_params = init_params(kparam, perms_np)

    x_img = jax.random.normal(kx, (BATCH, 1, *IMG_SIZE), jnp.float32)   # NCHW
    label = jax.random.randint(klabel, (BATCH,), 0, N_COND)

    fwd = jax.jit(cinn_forward)
    z, log_jac = fwd(x_img, label, params)
    jax.block_until_ready((z, log_jac))

    z_ref, lj_ref = reference_forward(x_img, label, ref_params, perms_np)
    assert z.shape == (BATCH, DIMS) and log_jac.shape == (BATCH,)
    err_z = float(jnp.max(jnp.abs(z - z_ref)))
    err_j = float(jnp.max(jnp.abs(log_jac - lj_ref)))
    # Both sides use identical (bf16-rounded) weights; the bound absorbs the
    # backend-dependent MXU f32 accumulation mode amplified over 20 blocks.
    assert err_z < 1e-1, f"z mismatch: {err_z}"
    assert err_j < 1.0, f"log_jac mismatch: {err_j}"

    print("KERNEL_OK")
</pallas_src>

<mosaic_0001>
module attributes {stable_mosaic.version = 11 : i64} {
  func.func @_fused_cinn_kernel(%arg0: i32, %arg1: memref<2x784xf32, #tpu.memory_space<vmem>>, %arg2: memref<1x2x2x64xf32, #tpu.memory_space<vmem>>, %arg3: memref<1x4x1x784xf32, #tpu.memory_space<vmem>>, %arg4: memref<1x2x784x64xbf16, #tpu.memory_space<vmem>>, %arg5: memref<1x4x64x784xbf16, #tpu.memory_space<vmem>>, %arg6: memref<2x784xf32, #tpu.memory_space<vmem>>, %arg7: memref<2x1xf32, #tpu.memory_space<vmem>>, %arg8: memref<2x784xf32, #tpu.memory_space<vmem>>, %arg9: memref<2x1xf32, #tpu.memory_space<vmem>>) attributes {dimension_semantics = [#tpu.dimension_semantics<arbitrary>], iteration_bounds = array<i64: 20>, scalar_prefetch = 0 : i64, scratch_operands = 2 : i64, tpu.core_type = #tpu.core_type<tc>, window_params = [{pipeline_mode = #tpu.pipeline_mode<synchronous>, transform_indices = @transform_0, window_bounds = array<i64: 2, 784>}, {transform_indices = @transform_1, window_bounds = array<i64: 1, 2, 2, 64>}, {transform_indices = @transform_2, window_bounds = array<i64: 1, 4, 1, 784>}, {transform_indices = @transform_3, window_bounds = array<i64: 1, 2, 784, 64>}, {transform_indices = @transform_4, window_bounds = array<i64: 1, 4, 64, 784>}, {pipeline_mode = #tpu.pipeline_mode<synchronous>, transform_indices = @transform_5, window_bounds = array<i64: 2, 784>}, {pipeline_mode = #tpu.pipeline_mode<synchronous>, transform_indices = @transform_6, window_bounds = array<i64: 2, 1>}]} {
    %c0_i32 = arith.constant 0 : i32
    %0 = arith.cmpi eq, %arg0, %c0_i32 : i32
    %1 = arith.extui %0 : i1 to i32
    %c0_i32_0 = arith.constant 0 : i32
    %2 = arith.cmpi ne, %1, %c0_i32_0 : i32
    scf.if %2 {
      %c0_103 = arith.constant 0 : index
      %c0_104 = arith.constant 0 : index
      %172 = vector.load %arg1[%c0_103, %c0_104] : memref<2x784xf32, #tpu.memory_space<vmem>>, vector<2x784xf32>
      %c0_105 = arith.constant 0 : index
      %c0_106 = arith.constant 0 : index
      %173 = vector.load %arg8[%c0_105, %c0_106] : memref<2x784xf32, #tpu.memory_space<vmem>>, vector<2x784xf32>
      tpu.vector_store %arg8[%c0_105, %c0_106], %172 {strides = array<i32>} : memref<2x784xf32, #tpu.memory_space<vmem>>, vector<2x784xf32>,
      %cst_107 = arith.constant 0.000000e+00 : f32
      %174 = vector.broadcast %cst_107 : f32 to vector<2x1xf32>
      %c0_108 = arith.constant 0 : index
      %c0_109 = arith.constant 0 : index
      %175 = vector.load %arg9[%c0_108, %c0_109] : memref<2x1xf32, #tpu.memory_space<vmem>>, vector<2x1xf32>
      tpu.vector_store %arg9[%c0_108, %c0_109], %174 {strides = array<i32>} : memref<2x1xf32, #tpu.memory_space<vmem>>, vector<2x1xf32>,
    } else {
    }
    %c0 = arith.constant 0 : index
    %c0_1 = arith.constant 0 : index
    %3 = vector.load %arg8[%c0, %c0_1] : memref<2x784xf32, #tpu.memory_space<vmem>>, vector<2x784xf32>
    %c0_2 = arith.constant 0 : index
    %c1 = arith.constant 1 : index
    %c0_3 = arith.constant 0 : index
    %c0_4 = arith.constant 0 : index
    %4 = vector.load %arg4[%c0_2, %c1, %c0_3, %c0_4] : memref<1x2x784x64xbf16, #tpu.memory_space<vmem>>, vector<1x1x784x64xbf16>
    %5 = vector.shape_cast %4 : vector<1x1x784x64xbf16> to vector<784x64xbf16>
    %6 = arith.extf %5 : vector<784x64xbf16> to vector<784x64xf32>
    %cst = arith.constant dense<0.000000e+00> : vector<2x64xf32>
    %7 = tpu.matmul %3, %6, %cst {dimension_numbers = #tpu.dot_dimension_numbers<[1], [0], [0], [1], [0, 0, 1, 1], [], []>} : vector<2x784xf32>, vector<784x64xf32>, vector<2x64xf32> -> vector<2x64xf32>
    %c0_5 = arith.constant 0 : index
    %c1_6 = arith.constant 1 : index
    %c0_7 = arith.constant 0 : index
    %c0_8 = arith.constant 0 : index
    %8 = vector.load %arg2[%c0_5, %c1_6, %c0_7, %c0_8] : memref<1x2x2x64xf32, #tpu.memory_space<vmem>>, vector<1x1x2x64xf32>
    %9 = vector.shape_cast %8 : vector<1x1x2x64xf32> to vector<2x64xf32>
    %10 = arith.addf %7, %9 : vector<2x64xf32>
    %cst_9 = arith.constant 0.000000e+00 : f32
    %11 = vector.broadcast %cst_9 : f32 to vector<2x64xf32>
    %12 = arith.maximumf %10, %11 : vector<2x64xf32>
    %c0_10 = arith.constant 0 : index
    %c2 = arith.constant 2 : index
    %c0_11 = arith.constant 0 : index
    %c0_12 = arith.constant 0 : index
    %13 = vector.load %arg5[%c0_10, %c2, %c0_11, %c0_12] : memref<1x4x64x784xbf16, #tpu.memory_space<vmem>>, vector<1x1x64x784xbf16>
    %14 = vector.shape_cast %13 : vector<1x1x64x784xbf16> to vector<64x784xbf16>
    %15 = arith.extf %14 : vector<64x784xbf16> to vector<64x784xf32>
    %c0_13 = arith.constant 0 : index
    %c3 = arith.constant 3 : index
    %c0_14 = arith.constant 0 : index
    %c0_15 = arith.constant 0 : index
    %16 = vector.load %arg5[%c0_13, %c3, %c0_14, %c0_15] : memref<1x4x64x784xbf16, #tpu.memory_space<vmem>>, vector<1x1x64x784xbf16>
    %17 = vector.shape_cast %16 : vector<1x1x64x784xbf16> to vector<64x784xbf16>
    %18 = arith.extf %17 : vector<64x784xbf16> to vector<64x784xf32>
    %cst_16 = arith.constant dense<0.000000e+00> : vector<2x784xf32>
    %19 = tpu.matmul %12, %15, %cst_16 {dimension_numbers = #tpu.dot_dimension_numbers<[1], [0], [0], [1], [0, 0, 1, 1], [], []>} : vector<2x64xf32>, vector<64x784xf32>, vector<2x784xf32> -> vector<2x784xf32>
    %c0_17 = arith.constant 0 : index
    %c2_18 = arith.constant 2 : index
    %c0_19 = arith.constant 0 : index
    %c0_20 = arith.constant 0 : index
    %20 = vector.load %arg3[%c0_17, %c2_18, %c0_19, %c0_20] : memref<1x4x1x784xf32, #tpu.memory_space<vmem>>, vector<1x1x1x784xf32>
    %21 = vector.shape_cast %20 : vector<1x1x1x784xf32> to vector<1x784xf32>
    %22 = vector.broadcast %21 : vector<1x784xf32> to vector<2x784xf32>
    %23 = arith.addf %19, %22 : vector<2x784xf32>
    %cst_21 = arith.constant dense<0.000000e+00> : vector<2x784xf32>
    %24 = tpu.matmul %12, %18, %cst_21 {dimension_numbers = #tpu.dot_dimension_numbers<[1], [0], [0], [1], [0, 0, 1, 1], [], []>} : vector<2x64xf32>, vector<64x784xf32>, vector<2x784xf32> -> vector<2x784xf32>
    %c0_22 = arith.constant 0 : index
    %c3_23 = arith.constant 3 : index
    %c0_24 = arith.constant 0 : index
    %c0_25 = arith.constant 0 : index
    %25 = vector.load %arg3[%c0_22, %c3_23, %c0_24, %c0_25] : memref<1x4x1x784xf32, #tpu.memory_space<vmem>>, vector<1x1x1x784xf32>
    %26 = vector.shape_cast %25 : vector<1x1x1x784xf32> to vector<1x784xf32>
    %27 = vector.broadcast %26 : vector<1x784xf32> to vector<2x784xf32>
    %28 = arith.addf %24, %27 : vector<2x784xf32>
    %cst_26 = arith.constant 1.000000e+00 : f32
    %29 = vector.broadcast %cst_26 : f32 to vector<2x784xf32>
    %30 = arith.divf %23, %29 : vector<2x784xf32>
    %cst_27 = arith.constant 0.000000e+00 : f32
    %31 = vector.broadcast %cst_27 : f32 to vector<2x784xf32>
    %32 = arith.cmpf olt, %30, %31 : vector<2x784xf32>
    %cst_28 = arith.constant -1.000000e+00 : f32
    %cst_29 = arith.constant 1.000000e+00 : f32
    %33 = vector.broadcast %cst_28 : f32 to vector<2x784xf32>
    %34 = vector.broadcast %cst_29 : f32 to vector<2x784xf32>
    %35 = arith.select %32, %33, %34 : vector<2x784xi1>, vector<2x784xf32>
    %cst_30 = arith.constant 0.000000e+00 : f32
    %36 = vector.broadcast %cst_30 : f32 to vector<2x784xf32>
    %37 = arith.cmpf olt, %30, %36 : vector<2x784xf32>
    %cst_31 = arith.constant 0.000000e+00 : f32
    %38 = vector.broadcast %cst_31 : f32 to vector<2x784xf32>
    %39 = arith.subf %38, %30 : vector<2x784xf32>
    %40 = arith.select %37, %39, %30 : vector<2x784xi1>, vector<2x784xf32>
    %cst_32 = arith.constant 2.41421366 : f32
    %41 = vector.broadcast %cst_32 : f32 to vector<2x784xf32>
    %42 = arith.cmpf ogt, %40, %41 : vector<2x784xf32>
    %cst_33 = arith.constant 0.414213568 : f32
    %43 = vector.broadcast %cst_33 : f32 to vector<2x784xf32>
    %44 = arith.cmpf ogt, %40, %43 : vector<2x784xf32>
    %cst_34 = arith.constant dense<true> : vector<2x784xi1>
    %45 = arith.xori %42, %cst_34 : vector<2x784xi1>
    %46 = arith.andi %44, %45 : vector<2x784xi1>
    %cst_35 = arith.constant -1.000000e+00 : f32
    %47 = vector.broadcast %cst_35 : f32 to vector<2x784xf32>
    %48 = arith.divf %47, %40 : vector<2x784xf32>
    %cst_36 = arith.constant 1.000000e+00 : f32
    %49 = vector.broadcast %cst_36 : f32 to vector<2x784xf32>
    %50 = arith.subf %40, %49 : vector<2x784xf32>
    %cst_37 = arith.constant 1.000000e+00 : f32
    %51 = vector.broadcast %cst_37 : f32 to vector<2x784xf32>
    %52 = arith.addf %40, %51 : vector<2x784xf32>
    %53 = arith.divf %50, %52 : vector<2x784xf32>
    %54 = arith.select %46, %53, %40 : vector<2x784xi1>, vector<2x784xf32>
    %55 = arith.select %42, %48, %54 : vector<2x784xi1>, vector<2x784xf32>
    %cst_38 = arith.constant 0.785398185 : f32
    %cst_39 = arith.constant 0.000000e+00 : f32
    %56 = vector.broadcast %cst_38 : f32 to vector<2x784xf32>
    %57 = vector.broadcast %cst_39 : f32 to vector<2x784xf32>
    %58 = arith.select %46, %56, %57 : vector<2x784xi1>, vector<2x784xf32>
    %cst_40 = arith.constant 1.57079637 : f32
    %59 = vector.broadcast %cst_40 : f32 to vector<2x784xf32>
    %60 = arith.select %42, %59, %58 : vector<2x784xi1>, vector<2x784xf32>
    %61 = arith.mulf %55, %55 : vector<2x784xf32>
    %cst_41 = arith.constant 0.0805374458 : f32
    %62 = vector.broadcast %cst_41 : f32 to vector<2x784xf32>
    %63 = arith.mulf %62, %61 : vector<2x784xf32>
    %cst_42 = arith.constant 0.138776854 : f32
    %64 = vector.broadcast %cst_42 : f32 to vector<2x784xf32>
    %65 = arith.subf %63, %64 : vector<2x784xf32>
    %66 = arith.mulf %65, %61 : vector<2x784xf32>
    %cst_43 = arith.constant 0.199777111 : f32
    %67 = vector.broadcast %cst_43 : f32 to vector<2x784xf32>
    %68 = arith.addf %66, %67 : vector<2x784xf32>
    %69 = arith.mulf %68, %61 : vector<2x784xf32>
    %cst_44 = arith.constant 0.333329499 : f32
    %70 = vector.broadcast %cst_44 : f32 to vector<2x784xf32>
    %71 = arith.subf %69, %70 : vector<2x784xf32>
    %72 = arith.mulf %71, %61 : vector<2x784xf32>
    %73 = arith.mulf %72, %55 : vector<2x784xf32>
    %74 = arith.addf %73, %55 : vector<2x784xf32>
    %75 = arith.addf %60, %74 : vector<2x784xf32>
    %76 = arith.mulf %35, %75 : vector<2x784xf32>
    %cst_45 = arith.constant 0.635999977 : f32
    %77 = vector.broadcast %cst_45 : f32 to vector<2x784xf32>
    %78 = arith.mulf %77, %76 : vector<2x784xf32>
    %79 = math.exp %78 : vector<2x784xf32>
    %80 = arith.mulf %79, %3 : vector<2x784xf32>
    %81 = arith.addf %80, %28 : vector<2x784xf32>
    %c0_46 = arith.constant 0 : index
    %c0_47 = arith.constant 0 : index
    %c0_48 = arith.constant 0 : index
    %c0_49 = arith.constant 0 : index
    %82 = vector.load %arg4[%c0_46, %c0_47, %c0_48, %c0_49] : memref<1x2x784x64xbf16, #tpu.memory_space<vmem>>, vector<1x1x784x64xbf16>
    %83 = vector.shape_cast %82 : vector<1x1x784x64xbf16> to vector<784x64xbf16>
    %84 = arith.extf %83 : vector<784x64xbf16> to vector<784x64xf32>
    %cst_50 = arith.constant dense<0.000000e+00> : vector<2x64xf32>
    %85 = tpu.matmul %81, %84, %cst_50 {dimension_numbers = #tpu.dot_dimension_numbers<[1], [0], [0], [1], [0, 0, 1, 1], [], []>} : vector<2x784xf32>, vector<784x64xf32>, vector<2x64xf32> -> vector<2x64xf32>
    %c0_51 = arith.constant 0 : index
    %c0_52 = arith.constant 0 : index
    %c0_53 = arith.constant 0 : index
    %c0_54 = arith.constant 0 : index
    %86 = vector.load %arg2[%c0_51, %c0_52, %c0_53, %c0_54] : memref<1x2x2x64xf32, #tpu.memory_space<vmem>>, vector<1x1x2x64xf32>
    %87 = vector.shape_cast %86 : vector<1x1x2x64xf32> to vector<2x64xf32>
    %88 = arith.addf %85, %87 : vector<2x64xf32>
    %cst_55 = arith.constant 0.000000e+00 : f32
    %89 = vector.broadcast %cst_55 : f32 to vector<2x64xf32>
    %90 = arith.maximumf %88, %89 : vector<2x64xf32>
    %c0_56 = arith.constant 0 : index
    %c0_57 = arith.constant 0 : index
    %c0_58 = arith.constant 0 : index
    %c0_59 = arith.constant 0 : index
    %91 = vector.load %arg5[%c0_56, %c0_57, %c0_58, %c0_59] : memref<1x4x64x784xbf16, #tpu.memory_space<vmem>>, vector<1x1x64x784xbf16>
    %92 = vector.shape_cast %91 : vector<1x1x64x784xbf16> to vector<64x784xbf16>
    %93 = arith.extf %92 : vector<64x784xbf16> to vector<64x784xf32>
    %c0_60 = arith.constant 0 : index
    %c1_61 = arith.constant 1 : index
    %c0_62 = arith.constant 0 : index
    %c0_63 = arith.constant 0 : index
    %94 = vector.load %arg5[%c0_60, %c1_61, %c0_62, %c0_63] : memref<1x4x64x784xbf16, #tpu.memory_space<vmem>>, vector<1x1x64x784xbf16>
    %95 = vector.shape_cast %94 : vector<1x1x64x784xbf16> to vector<64x784xbf16>
    %96 = arith.extf %95 : vector<64x784xbf16> to vector<64x784xf32>
    %cst_64 = arith.constant dense<0.000000e+00> : vector<2x784xf32>
    %97 = tpu.matmul %90, %93, %cst_64 {dimension_numbers = #tpu.dot_dimension_numbers<[1], [0], [0], [1], [0, 0, 1, 1], [], []>} : vector<2x64xf32>, vector<64x784xf32>, vector<2x784xf32> -> vector<2x784xf32>
    %c0_65 = arith.constant 0 : index
    %c0_66 = arith.constant 0 : index
    %c0_67 = arith.constant 0 : index
    %c0_68 = arith.constant 0 : index
    %98 = vector.load %arg3[%c0_65, %c0_66, %c0_67, %c0_68] : memref<1x4x1x784xf32, #tpu.memory_space<vmem>>, vector<1x1x1x784xf32>
    %99 = vector.shape_cast %98 : vector<1x1x1x784xf32> to vector<1x784xf32>
    %100 = vector.broadcast %99 : vector<1x784xf32> to vector<2x784xf32>
    %101 = arith.addf %97, %100 : vector<2x784xf32>
    %cst_69 = arith.constant dense<0.000000e+00> : vector<2x784xf32>
    %102 = tpu.matmul %90, %96, %cst_69 {dimension_numbers = #tpu.dot_dimension_numbers<[1], [0], [0], [1], [0, 0, 1, 1], [], []>} : vector<2x64xf32>, vector<64x784xf32>, vector<2x784xf32> -> vector<2x784xf32>
    %c0_70 = arith.constant 0 : index
    %c1_71 = arith.constant 1 : index
    %c0_72 = arith.constant 0 : index
    %c0_73 = arith.constant 0 : index
    %103 = vector.load %arg3[%c0_70, %c1_71, %c0_72, %c0_73] : memref<1x4x1x784xf32, #tpu.memory_space<vmem>>, vector<1x1x1x784xf32>
    %104 = vector.shape_cast %103 : vector<1x1x1x784xf32> to vector<1x784xf32>
    %105 = vector.broadcast %104 : vector<1x784xf32> to vector<2x784xf32>
    %106 = arith.addf %102, %105 : vector<2x784xf32>
    %cst_74 = arith.constant 1.000000e+00 : f32
    %107 = vector.broadcast %cst_74 : f32 to vector<2x784xf32>
    %108 = arith.divf %101, %107 : vector<2x784xf32>
    %cst_75 = arith.constant 0.000000e+00 : f32
    %109 = vector.broadcast %cst_75 : f32 to vector<2x784xf32>
    %110 = arith.cmpf olt, %108, %109 : vector<2x784xf32>
    %cst_76 = arith.constant -1.000000e+00 : f32
    %cst_77 = arith.constant 1.000000e+00 : f32
    %111 = vector.broadcast %cst_76 : f32 to vector<2x784xf32>
    %112 = vector.broadcast %cst_77 : f32 to vector<2x784xf32>
    %113 = arith.select %110, %111, %112 : vector<2x784xi1>, vector<2x784xf32>
    %cst_78 = arith.constant 0.000000e+00 : f32
    %114 = vector.broadcast %cst_78 : f32 to vector<2x784xf32>
    %115 = arith.cmpf olt, %108, %114 : vector<2x784xf32>
    %cst_79 = arith.constant 0.000000e+00 : f32
    %116 = vector.broadcast %cst_79 : f32 to vector<2x784xf32>
    %117 = arith.subf %116, %108 : vector<2x784xf32>
    %118 = arith.select %115, %117, %108 : vector<2x784xi1>, vector<2x784xf32>
    %cst_80 = arith.constant 2.41421366 : f32
    %119 = vector.broadcast %cst_80 : f32 to vector<2x784xf32>
    %120 = arith.cmpf ogt, %118, %119 : vector<2x784xf32>
    %cst_81 = arith.constant 0.414213568 : f32
    %121 = vector.broadcast %cst_81 : f32 to vector<2x784xf32>
    %122 = arith.cmpf ogt, %118, %121 : vector<2x784xf32>
    %cst_82 = arith.constant dense<true> : vector<2x784xi1>
    %123 = arith.xori %120, %cst_82 : vector<2x784xi1>
    %124 = arith.andi %122, %123 : vector<2x784xi1>
    %cst_83 = arith.constant -1.000000e+00 : f32
    %125 = vector.broadcast %cst_83 : f32 to vector<2x784xf32>
    %126 = arith.divf %125, %118 : vector<2x784xf32>
    %cst_84 = arith.constant 1.000000e+00 : f32
    %127 = vector.broadcast %cst_84 : f32 to vector<2x784xf32>
    %128 = arith.subf %118, %127 : vector<2x784xf32>
    %cst_85 = arith.constant 1.000000e+00 : f32
    %129 = vector.broadcast %cst_85 : f32 to vector<2x784xf32>
    %130 = arith.addf %118, %129 : vector<2x784xf32>
    %131 = arith.divf %128, %130 : vector<2x784xf32>
    %132 = arith.select %124, %131, %118 : vector<2x784xi1>, vector<2x784xf32>
    %133 = arith.select %120, %126, %132 : vector<2x784xi1>, vector<2x784xf32>
    %cst_86 = arith.constant 0.785398185 : f32
    %cst_87 = arith.constant 0.000000e+00 : f32
    %134 = vector.broadcast %cst_86 : f32 to vector<2x784xf32>
    %135 = vector.broadcast %cst_87 : f32 to vector<2x784xf32>
    %136 = arith.select %124, %134, %135 : vector<2x784xi1>, vector<2x784xf32>
    %cst_88 = arith.constant 1.57079637 : f32
    %137 = vector.broadcast %cst_88 : f32 to vector<2x784xf32>
    %138 = arith.select %120, %137, %136 : vector<2x784xi1>, vector<2x784xf32>
    %139 = arith.mulf %133, %133 : vector<2x784xf32>
    %cst_89 = arith.constant 0.0805374458 : f32
    %140 = vector.broadcast %cst_89 : f32 to vector<2x784xf32>
    %141 = arith.mulf %140, %139 : vector<2x784xf32>
    %cst_90 = arith.constant 0.138776854 : f32
    %142 = vector.broadcast %cst_90 : f32 to vector<2x784xf32>
    %143 = arith.subf %141, %142 : vector<2x784xf32>
    %144 = arith.mulf %143, %139 : vector<2x784xf32>
    %cst_91 = arith.constant 0.199777111 : f32
    %145 = vector.broadcast %cst_91 : f32 to vector<2x784xf32>
    %146 = arith.addf %144, %145 : vector<2x784xf32>
    %147 = arith.mulf %146, %139 : vector<2x784xf32>
    %cst_92 = arith.constant 0.333329499 : f32
    %148 = vector.broadcast %cst_92 : f32 to vector<2x784xf32>
    %149 = arith.subf %147, %148 : vector<2x784xf32>
    %150 = arith.mulf %149, %139 : vector<2x784xf32>
    %151 = arith.mulf %150, %133 : vector<2x784xf32>
    %152 = arith.addf %151, %133 : vector<2x784xf32>
    %153 = arith.addf %138, %152 : vector<2x784xf32>
    %154 = arith.mulf %113, %153 : vector<2x784xf32>
    %cst_93 = arith.constant 0.635999977 : f32
    %155 = vector.broadcast %cst_93 : f32 to vector<2x784xf32>
    %156 = arith.mulf %155, %154 : vector<2x784xf32>
    %157 = math.exp %156 : vector<2x784xf32>
    %158 = arith.mulf %157, %81 : vector<2x784xf32>
    %159 = arith.addf %158, %106 : vector<2x784xf32>
    %c0_94 = arith.constant 0 : index
    %c0_95 = arith.constant 0 : index
    %160 = vector.load %arg8[%c0_94, %c0_95] : memref<2x784xf32, #tpu.memory_space<vmem>>, vector<2x784xf32>
    tpu.vector_store %arg8[%c0_94, %c0_95], %159 {strides = array<i32>} : memref<2x784xf32, #tpu.memory_space<vmem>>, vector<2x784xf32>,
    %c0_96 = arith.constant 0 : index
    %c0_97 = arith.constant 0 : index
    %161 = vector.load %arg9[%c0_96, %c0_97] : memref<2x1xf32, #tpu.memory_space<vmem>>, vector<2x1xf32>
    %cst_98 = arith.constant dense<0.000000e+00> : vector<2xf32>
    %162 = vector.multi_reduction <add>, %156, %cst_98 [1] : vector<2x784xf32> to vector<2xf32>
    %163 = vector.shape_cast %162 : vector<2xf32> to vector<2x1xf32>
    %cst_99 = arith.constant dense<0.000000e+00> : vector<2xf32>
    %164 = vector.multi_reduction <add>, %78, %cst_99 [1] : vector<2x784xf32> to vector<2xf32>
    %165 = vector.shape_cast %164 : vector<2xf32> to vector<2x1xf32>
    %166 = arith.addf %163, %165 : vector<2x1xf32>
    %167 = arith.addf %161, %166 : vector<2x1xf32>
    %c0_100 = arith.constant 0 : index
    %c0_101 = arith.constant 0 : index
    %168 = vector.load %arg9[%c0_100, %c0_101] : memref<2x1xf32, #tpu.memory_space<vmem>>, vector<2x1xf32>
    tpu.vector_store %arg9[%c0_100, %c0_101], %167 {strides = array<i32>} : memref<2x1xf32, #tpu.memory_space<vmem>>, vector<2x1xf32>,
    %c19_i32 = arith.constant 19 : i32
    %169 = arith.cmpi eq, %arg0, %c19_i32 : i32
    %170 = arith.extui %169 : i1 to i32
    %c0_i32_102 = arith.constant 0 : i32
    %171 = arith.cmpi ne, %170, %c0_i32_102 : i32
    scf.if %171 {
      %c0_103 = arith.constant 0 : index
      %c0_104 = arith.constant 0 : index
      %172 = vector.load %arg8[%c0_103, %c0_104] : memref<2x784xf32, #tpu.memory_space<vmem>>, vector<2x784xf32>
      %c0_105 = arith.constant 0 : index
      %c0_106 = arith.constant 0 : index
      %173 = vector.load %arg6[%c0_105, %c0_106] : memref<2x784xf32, #tpu.memory_space<vmem>>, vector<2x784xf32>
      tpu.vector_store %arg6[%c0_105, %c0_106], %172 {strides = array<i32>} : memref<2x784xf32, #tpu.memory_space<vmem>>, vector<2x784xf32>,
      %c0_107 = arith.constant 0 : index
      %c0_108 = arith.constant 0 : index
      %174 = vector.load %arg9[%c0_107, %c0_108] : memref<2x1xf32, #tpu.memory_space<vmem>>, vector<2x1xf32>
      %c0_109 = arith.constant 0 : index
      %c0_110 = arith.constant 0 : index
      %175 = vector.load %arg7[%c0_109, %c0_110] : memref<2x1xf32, #tpu.memory_space<vmem>>, vector<2x1xf32>
      tpu.vector_store %arg7[%c0_109, %c0_110], %174 {strides = array<i32>} : memref<2x1xf32, #tpu.memory_space<vmem>>, vector<2x1xf32>,
    } else {
    }
    return
  }
  func.func @transform_0(%arg0: i32) -> (i32, i32) {
    %c0_i32 = arith.constant 0 : i32
    %c0_i32_0 = arith.constant 0 : i32
    %c0_i32_1 = arith.constant 0 : i32
    return %c0_i32, %c0_i32_0 : i32, i32
  }
  func.func @transform_1(%arg0: i32) -> (i32, i32, i32, i32) {
    %c0_i32 = arith.constant 0 : i32
    %c0_i32_0 = arith.constant 0 : i32
    %c0_i32_1 = arith.constant 0 : i32
    %c0_i32_2 = arith.constant 0 : i32
    return %arg0, %c0_i32, %c0_i32_0, %c0_i32_1 : i32, i32, i32, i32
  }
  func.func @transform_2(%arg0: i32) -> (i32, i32, i32, i32) {
    %c0_i32 = arith.constant 0 : i32
    %c0_i32_0 = arith.constant 0 : i32
    %c0_i32_1 = arith.constant 0 : i32
    %c0_i32_2 = arith.constant 0 : i32
    return %arg0, %c0_i32, %c0_i32_0, %c0_i32_1 : i32, i32, i32, i32
  }
  func.func @transform_3(%arg0: i32) -> (i32, i32, i32, i32) {
    %c0_i32 = arith.constant 0 : i32
    %c0_i32_0 = arith.constant 0 : i32
    %c0_i32_1 = arith.constant 0 : i32
    %c0_i32_2 = arith.constant 0 : i32
    return %arg0, %c0_i32, %c0_i32_0, %c0_i32_1 : i32, i32, i32, i32
  }
  func.func @transform_4(%arg0: i32) -> (i32, i32, i32, i32) {
    %c0_i32 = arith.constant 0 : i32
    %c0_i32_0 = arith.constant 0 : i32
    %c0_i32_1 = arith.constant 0 : i32
    %c0_i32_2 = arith.constant 0 : i32
    return %arg0, %c0_i32, %c0_i32_0, %c0_i32_1 : i32, i32, i32, i32
  }
  func.func @transform_5(%arg0: i32) -> (i32, i32) {
    %c0_i32 = arith.constant 0 : i32
    %c0_i32_0 = arith.constant 0 : i32
    %c0_i32_1 = arith.constant 0 : i32
    return %c0_i32, %c0_i32_0 : i32, i32
  }
  func.func @transform_6(%arg0: i32) -> (i32, i32) {
    %c0_i32 = arith.constant 0 : i32
    %c0_i32_0 = arith.constant 0 : i32
    %c0_i32_1 = arith.constant 0 : i32
    return %c0_i32, %c0_i32_0 : i32, i32
  }
}

</mosaic_0001>

<bundles_post_ra>
// kernel: cinn_forward.1
= control target key start
LH: loop header
LB: loop body
LE: loop exit
PB: predicated region body
PF: predicated region fallthrough
CT: control target
= control target key end

     0   :  { %s5581_s21 = smov 0   ;;  %s6856_s0 = inlined_call_operand.vmem [shape: f32[2,784], index: 0, kind: input, shape index: {}]   ;;  %s6857_s1 = inlined_call_operand.vmem [shape: f32[20,2,2,64], index: 1, kind: input, shape index: {}]   ;;  %s6858_s2 = inlined_call_operand.vmem [shape: f32[20,4,1,784], index: 2, kind: input, shape index: {}]   ;;  %s6859_s3 = inlined_call_operand.vmem [shape: bf16[20,2,784,64], index: 3, kind: input, shape index: {}]   ;;  %s6860_s4 = inlined_call_operand.vmem [shape: bf16[20,4,64,784], index: 4, kind: input, shape index: {}]   ;;  %s6861_s5 = inlined_call_operand.vmem [shape: f32[2,784], index: 5, kind: output, shape index: {0}]   ;;  %s6862_s6 = inlined_call_operand.vmem [shape: f32[2,1], index: 6, kind: output, shape index: {1}]  }
   0x1 LB: > { %s5587_s22 = sadd.s32 4294967295, %s5537_s21   ;;  %p3618_p0 = scmp.ge.s32.totalorder %s5537_s21, 1  ;;  %s5537_s21 = sphi %s5581_s21, %s17_s21  }
   0x2   : > { %p234_p1 = scmp.lt.s32.totalorder %s5537_s21, 21 }
   0x4   : > { %p235_p2 = pnand %p3618_p0, %p234_p1 }
   0x5   : > { %p273_p3 = scmp.lt.s32.totalorder (!%p235_p2), %s5587_s22, 19  ;;  %p3623_p4 = scmp.ne.s32.totalorder (!%p235_p2), %s5587_s22, 0 }
   0x6   : > { %238 = sbr.rel (%p235_p2) target bundleno = 1300 (0x514), region = 40 }
   0xd   : > { %s274_s23 = scalar_select %p273_p3, %s5587_s22, 19 }
   0xe   : > { %295 = sbr.rel (%p3623_p4) target bundleno = 21 (0x15), region = 44  ;;  %v296_v0 = vld [vmem:[%s6856_s0] sm:$0xff] (!%p3623_p4)  ;;  %v297_v1 = vld [vmem:[%s6856_s0 + $0x8] sm:$0x3f] (!%p3623_p4)  ;;  %vm299_vm0 = vcmask (!%p3623_p4), 1041408   ;;  %vm300_vm1 = vcmask (!%p3623_p4), 1043458  }
   0xf   : > { %s3885_s24 = sshll.u32 %s274_s23, 2  ;;  %s5267_s25 = smul.u32 28, %s274_s23  ;;  %vm302_vm2 = vcmask (!%p3623_p4), 128004   ;;  %298 = vst [vmem:[#allocation2] sm:$0xff] (!%p3623_p4), %v296_v0  ;;  %vm301_vm3 = vmor (!%p3623_p4), %vm300_vm1, %vm299_vm0  ;;  %vm305_vm4 = vcmask (!%p3623_p4), 1024   ;;  %v5539_v2 = vmov (!%p3623_p4), 0.0  }
  0x10   : > { %s5596_s28 = scalar_lea.vmem %s6857_s1, %s3885_s24  ;;  %s5268_s29 = smul.u32 784, %s274_s23  ;;  %vm303_vm5 = vmor (!%p3623_p4), %vm302_vm2, %vm301_vm3  ;;  %306 = vst.msk [vmem:[#allocation3] sm:$0x3] (!%p3623_p4), %vm305_vm4, %v5539_v2 }
  0x11   : > { %s5601_s8 = scalar_lea.vmem %s6858_s2, %s5267_s25  ;;  %s5269_s9 = smul.u32 896, %s274_s23  ;;  %304 = vst.msk [vmem:[#allocation2 + $0x8] sm:$0x3f] (!%p3623_p4), %vm303_vm5, %v297_v1 }
  0x12   : > { %s5606_s12 = scalar_lea.vmem %s6859_s3, %s5268_s29 }
  0x13   : > { %s5611_s15 = scalar_lea.vmem %s6860_s4, %s5269_s9 }
  0x15 PF: > { %v4286_v3 = vld [vmem:[%s5606_s12 + $0x1c8] sm:$0xff]   ;;  %v514_v6 = vlaneseq  ;;  %v4287_v8 = vld [vmem:[%s5606_s12 + $0x1d0] sm:$0xff]   ;;  %v5540_v9 = vmov 1983009808   ;;  %v4288_v16 = vld [vmem:[%s5606_s12 + $0x1d8] sm:$0xff]   ;;  %v5541_v55 = vmov 0.0  }
  0x16   : > { %v4278_v4 = vld [vmem:[%s5606_s12 + $0x188] sm:$0xff]   ;;  %4718 = vmatprep.subr.bf16.mxu0 %v4286_v3  ;;  %v512_v10 = vunpack.c.l.s4 %v5540_v9  ;;  %v4303_v11 = vld [vmem:[%s5606_s12 + $0x250] sm:$0xff]   ;;  %v4304_v17 = vld [vmem:[%s5606_s12 + $0x258] sm:$0xff]   ;;  %vm6865_vm6 = vmmov 0   ;;  %vm6864_vm7 = vcmask 130048   ;;  %vm6863_vm8 = vcmask 523264  }
  0x17   : > { %v4302_v5 = vld [vmem:[%s5606_s12 + $0x248] sm:$0xff]   ;;  %4720 = vmatpush3.bf16.msra.mxu0 %v4278_v4  ;;  %v4279_v12 = vld [vmem:[%s5606_s12 + $0x190] sm:$0xff]   ;;  %v5628_v15 = vshrl.u32 %v514_v6, 7  ;;  %v4280_v18 = vld [vmem:[%s5606_s12 + $0x198] sm:$0xff]   ;;  %v5542_v4 = vmov 0.0|0.0   ;;  %vm5544_vm15 = vmmov 1  }
  0x18   : > { %4750 = vmatprep.subr.bf16.mxu1 %v4302_v5  ;;  %v4294_v7 = vld [vmem:[%s5606_s12 + $0x208] sm:$0xff]   ;;  %4722 = vmatprep.subr.bf16.mxu0 %v4287_v8  ;;  %v4295_v13 = vld [vmem:[%s5606_s12 + $0x210] sm:$0xff]   ;;  %v513_v14 = vunpack.c.0.s8 %v512_v10  ;;  %v4296_v19 = vld [vmem:[%s5606_s12 + $0x218] sm:$0xff]   ;;  %p3882_p5 = scmp.ne.s32.totalorder %s5587_s22, 19 }
  0x19   : > { %4752 = vmatpush3.bf16.msra.mxu1 %v4294_v7  ;;  %v4289_v21 = vld [vmem:[%s5606_s12 + $0x1e0] sm:$0xff]   ;;  %v4290_v28 = vld [vmem:[%s5606_s12 + $0x1e8] sm:$0xff]   ;;  %v4291_v35 = vld [vmem:[%s5606_s12 + $0x1f0] sm:$0xff]  }
  0x1a   : > { %4754 = vmatprep.subr.bf16.mxu1 %v4303_v11  ;;  %v5635_v20 = vsub.s32 %v513_v14, %v5628_v15  ;;  %v4305_v22 = vld [vmem:[%s5606_s12 + $0x260] sm:$0xff]   ;;  %v4306_v29 = vld [vmem:[%s5606_s12 + $0x268] sm:$0xff]   ;;  %v4307_v36 = vld [vmem:[%s5606_s12 + $0x270] sm:$0xff]  }
  0x1b   : > { %4724 = vmatpush3.bf16.msra.mxu0 %v4279_v12  ;;  %v307_v23 = vld [vmem:[#allocation2] sm:$0xff]  ;;  %v4282_v32 = vld [vmem:[%s5606_s12 + $0x1a8] sm:$0xff]   ;;  %v4283_v37 = vld [vmem:[%s5606_s12 + $0x1b0] sm:$0xff]  }
  0x1c   : > { %4726 = vmatprep.subr.bf16.mxu0 %v4288_v16  ;;  %v4281_v24 = vld [vmem:[%s5606_s12 + $0x1a0] sm:$0xff]   ;;  %v5642_v26 = vrot.slane %v307_v23, %v5635_v20  ;;  %v510_v27 = vcombine.high %v307_v23, %v307_v23  ;;  %v4298_v33 = vld [vmem:[%s5606_s12 + $0x228] sm:$0xff]   ;;  %v4299_v38 = vld [vmem:[%s5606_s12 + $0x230] sm:$0xff]  }
  0x1d   : > { %4756 = vmatpush3.bf16.msra.mxu1 %v4295_v13  ;;  %v4297_v25 = vld [vmem:[%s5606_s12 + $0x220] sm:$0xff]   ;;  %v4292_v39 = vld [vmem:[%s5606_s12 + $0x1f8] sm:$0xff]   ;;  %v308_v43 = vld [vmem:[#allocation2 + $0x8] sm:$0x3f] }
  0x1e   : > { %4758 = vmatprep.subr.bf16.mxu1 %v4304_v17  ;;  %v5648_v30 = vcombine.high %v5642_v26, %v5642_v26  ;;  %v5651_v31 = vrot.slane %v510_v27, %v5635_v20  ;;  %v4308_v40 = vld [vmem:[%s5606_s12 + $0x278] sm:$0xff]   ;;  %v4293_v44 = vld [vmem:[%s5606_s12 + $0x200] sm:$0xff]   ;;  %v4318_v48 = vld [vmem:[%s5606_s12 + $0x2c8] sm:$0xff]   ;;  %v5675_v49 = vrot.slane %v308_v43, %v5635_v20  ;;  %v527_v3 = vcombine.high %v308_v43, %v308_v43 }
  0x1f   : > { %4728 = vmatpush3.bf16.msra.mxu0 %v4280_v18  ;;  %v4284_v41 = vld [vmem:[%s5606_s12 + $0x1b8] sm:$0xff]   ;;  %v4309_v45 = vld [vmem:[%s5606_s12 + $0x280] sm:$0xff]   ;;  %v4310_v50 = vld [vmem:[%s5606_s12 + $0x288] sm:$0xff]  }
  0x20   : > { %4730 = vmatprep.subr.bf16.mxu0 %v4289_v21  ;;  %v5657_v34 = vcombine.high %v5651_v31, %v5651_v31  ;;  %616 = vmatprep.mubr.f32.mxu0 %v5648_v30  ;;  %v4300_v42 = vld [vmem:[%s5606_s12 + $0x238] sm:$0xff]   ;;  %v4285_v46 = vld [vmem:[%s5606_s12 + $0x1c0] sm:$0xff]   ;;  %v4319_v51 = vld [vmem:[%s5606_s12 + $0x2d0] sm:$0xff]   ;;  %v5681_v52 = vcombine.high %v5675_v49, %v5675_v49  ;;  %v5704_v6 = vrot.slane %v527_v3, %v5635_v20 }
  0x21   : > { %4760 = vmatpush3.bf16.msra.mxu1 %v4296_v19  ;;  %v4301_v47 = vld [vmem:[%s5606_s12 + $0x240] sm:$0xff]   ;;  %v4311_v53 = vld [vmem:[%s5606_s12 + $0x290] sm:$0xff]   ;;  %v4320_v54 = vld [vmem:[%s5606_s12 + $0x2d8] sm:$0xff]  }
  0x22   : > { %4762 = vmatprep.subr.bf16.mxu1 %v4305_v22  ;;  %686 = vmatprep.mubr.f32.mxu1 %v5657_v34  ;;  %v4312_v56 = vld [vmem:[%s5606_s12 + $0x298] sm:$0xff]   ;;  %v4321_v57 = vld [vmem:[%s5606_s12 + $0x2e0] sm:$0xff]   ;;  %v4322_v59 = vld [vmem:[%s5606_s12 + $0x2e8] sm:$0xff]  }
  0x23   : > { %4732 = vmatpush3.bf16.msra.mxu0 %v4281_v24  ;;  %v4313_v58 = vld [vmem:[%s5606_s12 + $0x2a0] sm:$0xff]   ;;  %v4314_v60 = vld [vmem:[%s5606_s12 + $0x2a8] sm:$0xff]   ;;  %v4323_v61 = vld [vmem:[%s5606_s12 + $0x2f0] sm:$0xff]  }
  0x24   : > { %4734 = vmatprep.subr.bf16.mxu0 %v4290_v28  ;;  %v4315_v62 = vld [vmem:[%s5606_s12 + $0x2b0] sm:$0xff]   ;;  %v4324_v63 = vld [vmem:[%s5606_s12 + $0x2f8] sm:$0xff]   ;;  %v4325_v1 = vld [vmem:[%s5606_s12 + $0x300] sm:$0xff]  }
  0x25   : > { %4764 = vmatpush3.bf16.msra.mxu1 %v4297_v25  ;;  %v4316_v0 = vld [vmem:[%s5606_s12 + $0x2b8] sm:$0xff]   ;;  %v4317_v2 = vld [vmem:[%s5606_s12 + $0x2c0] sm:$0xff]   ;;  %v4326_v5 = vld [vmem:[%s5606_s12 + $0x308] sm:$0xff]  }
  0x26   : > { %4766 = vmatprep.subr.bf16.mxu1 %v4306_v29  ;;  %v5287_v7 = vld [vmem:[%s5611_s15 + $0x1c4] ss:$28 sps:$4 sm:$0xff]   ;;  %v5290_v9 = vld [vmem:[%s5611_s15 + $0x1d4] ss:$28 sps:$4 sm:$0xff]   ;;  %v5293_v11 = vld [vmem:[%s5611_s15 + $0x1fc] ss:$28 sps:$4 sm:$0xff]  }
  0x27   : > { %4736 = vmatpush3.bf16.msra.mxu0 %v4282_v32  ;;  %v5289_v8 = vld [vmem:[%s5611_s15 + $0x1c0] ss:$28 sps:$4 sm:$0xff]   ;;  %v5292_v10 = vld [vmem:[%s5611_s15 + $0x1d0] ss:$28 sps:$4 sm:$0xff]   ;;  %v5295_v13 = vld [vmem:[%s5611_s15 + $0x1f8] ss:$28 sps:$4 sm:$0xff]  }
  0x28   : > { %4738 = vmatprep.subr.bf16.mxu0 %v4291_v35  ;;  %v5296_v12 = vld [vmem:[%s5611_s15 + $0x20c] ss:$28 sps:$4 sm:$0xff]   ;;  %v5299_v16 = vld [vmem:[%s5611_s15 + $0x234] ss:$28 sps:$4 sm:$0xff]   ;;  %v5302_v17 = vld [vmem:[%s5611_s15 + $0x244] ss:$28 sps:$4 sm:$0xff]  }
  0x29   : > { %4768 = vmatpush3.bf16.msra.mxu1 %v4298_v33  ;;  %v5298_v14 = vld [vmem:[%s5611_s15 + $0x208] ss:$28 sps:$4 sm:$0xff]   ;;  %v5301_v18 = vld [vmem:[%s5611_s15 + $0x230] ss:$28 sps:$4 sm:$0xff]   ;;  %v5304_v19 = vld [vmem:[%s5611_s15 + $0x240] ss:$28 sps:$4 sm:$0xff]  }
  0x2a   : > { %4770 = vmatprep.subr.bf16.mxu1 %v4307_v36  ;;  %v5305_v21 = vld [vmem:[%s5611_s15 + $0x26c] ss:$28 sps:$4 sm:$0xff]   ;;  %v5308_v22 = vld [vmem:[%s5611_s15 + $0x27c] ss:$28 sps:$4 sm:$0xff]   ;;  %v5314_v27 = vld [vmem:[%s5611_s15 + $0x2a4] ss:$28 sps:$4 sm:$0xff]  }
  0x2b   : > { %4740 = vmatpush3.bf16.msra.mxu0 %v4283_v37  ;;  %v5307_v23 = vld [vmem:[%s5611_s15 + $0x268] ss:$28 sps:$4 sm:$0xff]   ;;  %v5310_v24 = vld [vmem:[%s5611_s15 + $0x278] ss:$28 sps:$4 sm:$0xff]   ;;  %v3722_v32 = vld [vmem:[%s5596_s28 + $0x2] sm:$0x3] }
  0x2c   : > { %4742 = vmatprep.subr.bf16.mxu0 %v4292_v39  ;;  %v5311_v25 = vld [vmem:[%s5611_s15 + $0x1cc] ss:$28 sps:$4 sm:$0xff]   ;;  %v5338_v3 = vld [vmem:[%s5611_s15 + $0x1d8] ss:$28 sps:$4 sm:$0xff]  }
  0x2d   : > { %4772 = vmatpush3.bf16.msra.mxu1 %v4299_v38 }
  0x2e   : > { %4774 = vmatprep.subr.bf16.mxu1 %v4308_v40 }
  0x2f   : > { %4744 = vmatpush3.bf16.msra.mxu0 %v4284_v41 }
  0x30   : > { %4746 = vmatprep.subr.bf16.mxu0 %v4293_v44 }
  0x31   : > { %4776 = vmatpush3.bf16.msra.mxu1 %v4300_v42 }
  0x32   : > { %4778 = vmatprep.subr.bf16.mxu1 %v4309_v45 }
  0x33   : > { %4748 = vmatpush3.bf16.msra.mxu0 %v4285_v46 }
  0x34   : > { %4782 = vmatprep.subr.bf16.mxu0 %v4318_v48  ;;  %v5316_v48 = vld [vmem:[%s5611_s15 + $0x2a0] ss:$28 sps:$4 sm:$0xff]  }
  0x35   : > { %4780 = vmatpush3.bf16.msra.mxu1 %v4301_v47  ;;  %v5313_v47 = vld [vmem:[%s5611_s15 + $0x1c8] ss:$28 sps:$4 sm:$0xff]  }
  0x36   : > { %617 = vmatmul.mubr.f32.vlgmr.msra.gmra.mrb[0].mxu0 %v5642_v26  ;;  %4817 = vmatprep.subr.bf16.mxu1 %v5287_v7  ;;  %v5341_v7 = vld [vmem:[%s5611_s15 + $0x2e8] ss:$28 sps:$4 sm:$0xff]  }
  0x37   : > { %4784 = vmatpush3.bf16.msra.mxu0 %v4310_v50  ;;  %756 = vmatprep.mubr.f32.mxu0 %v5681_v52 }
  0x38   : > { %687 = vmatmul.mubr.f32.vlgmr.msra.gmra.mrb[0].mxu1 %v5651_v31  ;;  %4786 = vmatprep.subr.bf16.mxu0 %v4319_v51  ;;  %v5317_v51 = vld [vmem:[%s5611_s15 + $0x204] ss:$28 sps:$4 sm:$0xff]  }
  0x39   : > { %1117 = vmatprep.mubr.f32.mxu1 %v5541_v55  ;;  %4819 = vmatpush1.bf16.msra.mxu1 %v5289_v8  ;;  %v5342_v8 = vld [vmem:[%s5611_s15 + $0x210] ss:$28 sps:$4 sm:$0xff]  }
  0x3a   : > { %4821 = vmatprep.subr.bf16.mxu1 %v5293_v11  ;;  %v5346_v11 = vld [vmem:[%s5611_s15 + $0x248] ss:$28 sps:$4 sm:$0xff]  }
  0x3b   : > { %4788 = vmatpush3.bf16.msra.mxu0 %v4311_v53  ;;  %v5320_v53 = vld [vmem:[%s5611_s15 + $0x2dc] ss:$28 sps:$4 sm:$0xff]  }
  0x3c   : > { %4790 = vmatprep.subr.bf16.mxu0 %v4320_v54  ;;  %v5319_v54 = vld [vmem:[%s5611_s15 + $0x200] ss:$28 sps:$4 sm:$0xff]  }
  0x3d   : > { %4823 = vmatpush1.bf16.msra.mxu1 %v5295_v13  ;;  %v5349_v13 = vld [vmem:[%s5611_s15 + $0x358] ss:$28 sps:$4 sm:$0xff]  }
  0x3e   : > { %4825 = vmatprep.subr.bf16.mxu1 %v5299_v16  ;;  %v5351_v16 = vld [vmem:[%s5611_s15 + $0x2ac] ss:$28 sps:$4 sm:$0xff]  }
  0x3f   : > { %4792 = vmatpush3.bf16.msra.mxu0 %v4312_v56  ;;  %v5322_v56 = vld [vmem:[%s5611_s15 + $0x2d8] ss:$28 sps:$4 sm:$0xff]  }
  0x40   : > { %4794 = vmatprep.subr.bf16.mxu0 %v4321_v57  ;;  %v5323_v57 = vld [vmem:[%s5611_s15 + $0x23c] ss:$28 sps:$4 sm:$0xff]  }
  0x41   : > { %4827 = vmatpush1.bf16.msra.mxu1 %v5301_v18  ;;  %v5354_v18 = vld [vmem:[%s5611_s15 + $0x2e4] ss:$28 sps:$4 sm:$0xff]  }
  0x42   : > { %4829 = vmatprep.subr.bf16.mxu1 %v5305_v21  ;;  %v5357_v21 = vld [vmem:[%s5611_s15 + $0x31c] ss:$28 sps:$4 sm:$0xff]  }
  0x43   : > { %4796 = vmatpush3.bf16.msra.mxu0 %v4313_v58  ;;  %v5326_v58 = vld [vmem:[%s5611_s15 + $0x314] ss:$28 sps:$4 sm:$0xff]  }
  0x44   : > { %4798 = vmatprep.subr.bf16.mxu0 %v4322_v59  ;;  %v5325_v59 = vld [vmem:[%s5611_s15 + $0x238] ss:$28 sps:$4 sm:$0xff]  }
  0x45   : > { %4831 = vmatpush1.bf16.msra.mxu1 %v5307_v23  ;;  %v5360_v23 = vld [vmem:[%s5611_s15 + $0x354] ss:$28 sps:$4 sm:$0xff]  }
  0x46   : > { %4833 = vmatprep.subr.bf16.mxu1 %v5311_v25  ;;  %v5363_v25 = vld [vmem:[%s5611_s15 + $0x2b8] ss:$28 sps:$4 sm:$0xff]  }
  0x47   : > { %4800 = vmatpush3.bf16.msra.mxu0 %v4314_v60  ;;  %v5328_v60 = vld [vmem:[%s5611_s15 + $0x310] ss:$28 sps:$4 sm:$0xff]  }
  0x48   : > { %4802 = vmatprep.subr.bf16.mxu0 %v4323_v61  ;;  %v5329_v61 = vld [vmem:[%s5611_s15 + $0x274] ss:$28 sps:$4 sm:$0xff]  }
  0x4b   : > { %4804 = vmatpush3.bf16.msra.mxu0 %v4315_v62  ;;  %v5332_v62 = vld [vmem:[%s5611_s15 + $0x34c] ss:$28 sps:$4 sm:$0xff]  }
  0x4c   : > { %4806 = vmatprep.subr.bf16.mxu0 %v4324_v63  ;;  %v5331_v63 = vld [vmem:[%s5611_s15 + $0x270] ss:$28 sps:$4 sm:$0xff]  }
  0x4f   : > { %4808 = vmatpush3.bf16.msra.mxu0 %v4316_v0  ;;  %v5334_v0 = vld [vmem:[%s5611_s15 + $0x348] ss:$28 sps:$4 sm:$0xff]  }
  0x50   : > { %4810 = vmatprep.subr.bf16.mxu0 %v4325_v1  ;;  %v5335_v1 = vld [vmem:[%s5611_s15 + $0x2b4] ss:$28 sps:$4 sm:$0xff]  }
  0x53   : > { %4812 = vmatpush3.bf16.msra.mxu0 %v4317_v2  ;;  %v5337_v2 = vld [vmem:[%s5611_s15 + $0x2b0] ss:$28 sps:$4 sm:$0xff]  }
  0x54   : > { %4813 = vmatprep.subr.bf16.mxu0 %v5542_v4 }
  0x56   : > { %757 = vmatmul.mubr.f32.vlgmr.msra.gmra.mrb[2].mxu0 %v5675_v49 }
  0x57   : > { %4815 = vmatpush3.bf16.msra.mxu0 %v4326_v5  ;;  %4631 = vmatprep.mubr.msk.f32.mxu0 %vm6865_vm6, %v5541_v55  ;;  %v5339_v5 = vld [vmem:[%s5611_s15 + $0x2ec] ss:$28 sps:$4 sm:$0xff]  }
  0x58   : > { %4849 = vmatprep.subr.bf16.mxu0 %v5290_v9  ;;  %v5343_v9 = vld [vmem:[%s5611_s15 + $0x324] ss:$28 sps:$4 sm:$0xff]  }
  0x5a   : > { %4632 = vmatmul.mubr.msk.f32.vlgmr.msra.gmra.mrb[4].mxu0 %vm6864_vm7, %v5704_v6 }
  0x5b   : > { %1259 = vmatprep.mubr.f32.mxu0 %v5541_v55  ;;  %4851 = vmatpush1.bf16.msra.mxu0 %v5292_v10  ;;  %v5345_v10 = vld [vmem:[%s5611_s15 + $0x320] ss:$28 sps:$4 sm:$0xff]  }
  0x5c   : > { %4853 = vmatprep.subr.bf16.mxu0 %v5296_v12  ;;  %v5347_v12 = vld [vmem:[%s5611_s15 + $0x35c] ss:$28 sps:$4 sm:$0xff]  }
  0x5f   : > { %4855 = vmatpush1.bf16.msra.mxu0 %v5298_v14  ;;  %v5350_v14 = vld [vmem:[%s5611_s15 + $0x280] ss:$28 sps:$4 sm:$0xff]  }
  0x60   : > { %4857 = vmatprep.subr.bf16.mxu0 %v5302_v17  ;;  %v5353_v17 = vld [vmem:[%s5611_s15 + $0x2a8] ss:$28 sps:$4 sm:$0xff]  }
  0x63   : > { %4859 = vmatpush1.bf16.msra.mxu0 %v5304_v19  ;;  %v5356_v19 = vld [vmem:[%s5611_s15 + $0x2e0] ss:$28 sps:$4 sm:$0xff]  }
  0x64   : > { %4861 = vmatprep.subr.bf16.mxu0 %v5308_v22  ;;  %v5359_v22 = vld [vmem:[%s5611_s15 + $0x318] ss:$28 sps:$4 sm:$0xff]  }
  0x67   : > { %4863 = vmatpush1.bf16.msra.mxu0 %v5310_v24  ;;  %v5362_v24 = vld [vmem:[%s5611_s15 + $0x350] ss:$28 sps:$4 sm:$0xff]  }
  0x68   : > { %4877 = vmatprep.subr.bf16.mxu0 %v5314_v27  ;;  %v5364_v27 = vld [vmem:[%s5611_s15 + $0x2f0] ss:$28 sps:$4 sm:$0xff]  }
 0x109   : > { %v4407_v28 = vpop.f32.mrb[0].mxu0 }
 0x10a   : > { %v4408_v33 = vpop.f32.mrb[1].mxu0 }
 0x10b   : > { %v4442_v29 = vpop.f32.mrb[0].mxu1  ;;  %v4409_v36 = vadd.f32 %v4408_v33, %v4407_v28  ;;  %v5365_v28 = vld [vmem:[%s5611_s15 + $0x328] ss:$28 sps:$4 sm:$0xff]  }
 0x10c   : > { %v4443_v35 = vpop.f32.mrb[1].mxu1  ;;  %v4083_v33 = vld [vmem:[%s5606_s12] sm:$0xff]  }
 0x10d   : > { %v4444_v37 = vadd.f32 %v4443_v35, %v4442_v29  ;;  %v619_v38 = vadd.f32 %v4409_v36, %v3722_v32  ;;  %v5366_v29 = vld [vmem:[%s5611_s15 + $0x360] ss:$28 sps:$4 sm:$0xff]   ;;  %v4335_v35 = vld [vmem:[%s5606_s12 + $0x48] sm:$0xff]  }
 0x10e   : > { %v4334_v32 = vld [vmem:[%s5606_s12 + $0x40] sm:$0xff]   ;;  %v4327_v36 = vld [vmem:[%s5606_s12 + $0x8] sm:$0xff]  }
 0x10f   : > { %v689_v39 = vadd.f32 %v4444_v37, %v619_v38  ;;  %v4336_v37 = vld [vmem:[%s5606_s12 + $0x50] sm:$0xff]  }
 0x110   : > { %v4328_v38 = vld [vmem:[%s5606_s12 + $0x10] sm:$0xff]  }
 0x129   : > { %v4477_v40 = vpop.f32.mrb[2].mxu0 }
 0x12a   : > { %v4478_v41 = vpop.f32.mrb[3].mxu0 }
 0x12b   : > { %v4479_v42 = vadd.f32 %v4478_v41, %v4477_v40  ;;  %v4329_v40 = vld [vmem:[%s5606_s12 + $0x18] sm:$0xff]   ;;  %v4338_v41 = vld [vmem:[%s5606_s12 + $0x60] sm:$0xff]  }
 0x12d   : > { %v759_v43 = vadd.f32 %v4479_v42, %v689_v39  ;;  %v828_v44 = vpop.f32.mrb[4].mxu0  ;;  %v4337_v39 = vld [vmem:[%s5606_s12 + $0x58] sm:$0xff]   ;;  %v4350_v42 = vld [vmem:[%s5606_s12 + $0xc0] sm:$0xff]  }
 0x12e   : > { %v4633_v45 = vpop.f32.mrb[5].mxu0 }
 0x12f   : > { %v829_v46 = vadd.f32 %v828_v44, %v759_v43  ;;  %v4330_v43 = vld [vmem:[%s5606_s12 + $0x20] sm:$0xff]   ;;  %v4339_v45 = vld [vmem:[%s5606_s12 + $0x68] sm:$0xff]  }
 0x130   : > { %v4342_v44 = vld [vmem:[%s5606_s12 + $0x80] sm:$0xff]  }
 0x131   : > { %v5732_v50 = vmax.f32 %v829_v46, 0.0  ;;  %v4351_v46 = vld [vmem:[%s5606_s12 + $0xc8] sm:$0xff]  }
 0x133   : > { %3789 = vmatmul.mubr.msk.f32.vlgmr.msra.gmra.mrb[2].mxu1 %vm6863_vm8, %v5732_v50  ;;  %3791 = vmatmul.mubr.msk.f32.vlgmr.msra.gmra.mrb[6].mxu0 %vm6863_vm8, %v5732_v50 }
 0x134   : > { %4835 = vmatpush1.bf16.msra.mxu1 %v5313_v47  ;;  %4879 = vmatpush1.bf16.msra.mxu0 %v5316_v48  ;;  %v4331_v47 = vld [vmem:[%s5606_s12 + $0x28] sm:$0xff]  }
 0x135   : > { %4837 = vmatprep.subr.bf16.mxu1 %v5317_v51  ;;  %4881 = vmatprep.subr.bf16.mxu0 %v5320_v53  ;;  %v4343_v48 = vld [vmem:[%s5606_s12 + $0x88] sm:$0xff]   ;;  %v4352_v51 = vld [vmem:[%s5606_s12 + $0xd0] sm:$0xff]  }
 0x136   : > { %1188 = vmatprep.mubr.f32.mxu1 %v5541_v55  ;;  %1438 = vmatprep.mubr.f32.mxu0 %v5541_v55  ;;  %v4332_v53 = vld [vmem:[%s5606_s12 + $0x30] sm:$0xff]  }
 0x138   : > { %4839 = vmatpush1.bf16.msra.mxu1 %v5319_v54  ;;  %4883 = vmatpush1.bf16.msra.mxu0 %v5322_v56  ;;  %v4344_v54 = vld [vmem:[%s5606_s12 + $0x90] sm:$0xff]   ;;  %v4341_v56 = vld [vmem:[%s5606_s12 + $0x78] sm:$0xff]  }
 0x139   : > { %4841 = vmatprep.subr.bf16.mxu1 %v5323_v57  ;;  %4885 = vmatprep.subr.bf16.mxu0 %v5326_v58  ;;  %v4353_v57 = vld [vmem:[%s5606_s12 + $0xd8] sm:$0xff]  }
 0x13a   : > { %v4333_v58 = vld [vmem:[%s5606_s12 + $0x38] sm:$0xff]  }
 0x13c   : > { %4843 = vmatpush1.bf16.msra.mxu1 %v5325_v59  ;;  %4887 = vmatpush1.bf16.msra.mxu0 %v5328_v60  ;;  %v4345_v59 = vld [vmem:[%s5606_s12 + $0x98] sm:$0xff]   ;;  %v4354_v60 = vld [vmem:[%s5606_s12 + $0xe0] sm:$0xff]  }
 0x13d   : > { %4845 = vmatprep.subr.bf16.mxu1 %v5329_v61  ;;  %4889 = vmatprep.subr.bf16.mxu0 %v5332_v62  ;;  %v4366_v61 = vld [vmem:[%s5606_s12 + $0x140] sm:$0xff]  }
 0x13e   : > { %v4346_v62 = vld [vmem:[%s5606_s12 + $0xa0] sm:$0xff]  }
 0x140   : > { %4847 = vmatpush1.bf16.msra.mxu1 %v5331_v63  ;;  %4891 = vmatpush1.bf16.msra.mxu0 %v5334_v0  ;;  %v4355_v63 = vld [vmem:[%s5606_s12 + $0xe8] sm:$0xff]  }
 0x141   : > { %4864 = vmatprep.subr.bf16.mxu1 %v5542_v4  ;;  %4909 = vmatprep.subr.bf16.mxu0 %v5335_v1  ;;  %v4347_v0 = vld [vmem:[%s5606_s12 + $0xa8] sm:$0xff]   ;;  %v4356_v1 = vld [vmem:[%s5606_s12 + $0xf0] sm:$0xff]  }
 0x143   : > { %3790 = vmatmul.mubr.msk.f32.vlgmr.msra.gmra.mrb[4].mxu1 %vm6863_vm8, %v5732_v50  ;;  %3794 = vmatmul.mubr.msk.f32.vlgmr.msra.gmra.mrb[8].mxu0 %vm6863_vm8, %v5732_v50 }
 0x144   : > { %4866 = vmatpush3.bf16.msra.mxu1 %v5338_v3  ;;  %4911 = vmatpush1.bf16.msra.mxu0 %v5337_v2  ;;  %v4348_v2 = vld [vmem:[%s5606_s12 + $0xb0] sm:$0xff]   ;;  %v4357_v3 = vld [vmem:[%s5606_s12 + $0xf8] sm:$0xff]  }
 0x145   : > { %4867 = vmatprep.subr.bf16.mxu1 %v5542_v4  ;;  %4913 = vmatprep.subr.bf16.mxu0 %v5339_v5  ;;  %v4349_v5 = vld [vmem:[%s5606_s12 + $0xb8] sm:$0xff]  }
 0x146   : > { %4650 = vmatprep.mubr.msk.f32.mxu1 %vm6865_vm6, %v5541_v55  ;;  %1580 = vmatprep.mubr.f32.mxu0 %v5541_v55 }
 0x148   : > { %4869 = vmatpush3.bf16.msra.mxu1 %v5342_v8  ;;  %4915 = vmatpush1.bf16.msra.mxu0 %v5341_v7  ;;  %v5837_v7 = vsub.s32 0, %v5628_v15  ;;  %v5840_v8 = vsub.s32 4, %v5628_v15 }
 0x149   : > { %4870 = vmatprep.subr.bf16.mxu1 %v5542_v4  ;;  %4917 = vmatprep.subr.bf16.mxu0 %v5343_v9  ;;  %v5843_v9 = vld [vmem:[%s5601_s8 + $0xe] sm:$0x7f] }
 0x14c   : > { %4872 = vmatpush3.bf16.msra.mxu1 %v5346_v11  ;;  %4919 = vmatpush1.bf16.msra.mxu0 %v5345_v10  ;;  %v5846_v10 = vsub.s32 1, %v5628_v15  ;;  %v1017_v11 = vrot.slane %v5843_v9, %v5837_v7 }
 0x14d   : > { %4873 = vmatprep.subr.bf16.mxu1 %v5542_v4  ;;  %4921 = vmatprep.subr.bf16.mxu0 %v5347_v12  ;;  %v1033_v12 = vrot.slane %v5843_v9, %v5840_v8 }
 0x150   : > { %4875 = vmatpush3.bf16.msra.mxu1 %v5350_v14  ;;  %4923 = vmatpush1.bf16.msra.mxu0 %v5349_v13  ;;  %v1021_v13 = vrot.slane %v5843_v9, %v5846_v10  ;;  %v5855_v14 = vsub.s32 5, %v5628_v15 }
 0x151   : > { %4893 = vmatprep.subr.bf16.mxu1 %v5351_v16  ;;  %4937 = vmatprep.subr.bf16.mxu0 %v4334_v32 }
 0x153   : > { %4651 = vmatmul.mubr.msk.f32.vlgmr.msra.gmra.mrb[6].mxu1 %vm6863_vm8, %v5732_v50  ;;  %3796 = vmatmul.mubr.msk.f32.vlgmr.msra.gmra.mrb[10].mxu0 %vm6863_vm8, %v5732_v50 }
 0x154   : > { %4895 = vmatpush1.bf16.msra.mxu1 %v5353_v17  ;;  %1509 = vmatprep.mubr.f32.mxu1 %v5541_v55 }
 0x155   : > { %4897 = vmatprep.subr.bf16.mxu1 %v5354_v18  ;;  %4939 = vmatpush3.bf16.msra.mxu0 %v4083_v33 }
 0x156   : > { %4941 = vmatprep.subr.bf16.mxu0 %v4335_v35 }
 0x158   : > { %4899 = vmatpush1.bf16.msra.mxu1 %v5356_v19 }
 0x159   : > { %4901 = vmatprep.subr.bf16.mxu1 %v5357_v21  ;;  %4943 = vmatpush3.bf16.msra.mxu0 %v4327_v36 }
 0x15a   : > { %4945 = vmatprep.subr.bf16.mxu0 %v4336_v37 }
 0x15c   : > { %4903 = vmatpush1.bf16.msra.mxu1 %v5359_v22 }
 0x15d   : > { %4905 = vmatprep.subr.bf16.mxu1 %v5360_v23  ;;  %4947 = vmatpush3.bf16.msra.mxu0 %v4328_v38  ;;  %v5893_v38 = vsub.s32 2, %v5628_v15 }
 0x15e   : > { %4949 = vmatprep.subr.bf16.mxu0 %v4337_v39 }
 0x160   : > { %4907 = vmatpush1.bf16.msra.mxu1 %v5362_v24  ;;  %v1037_v24 = vrot.slane %v5843_v9, %v5855_v14 }
 0x161   : > { %4924 = vmatprep.subr.bf16.mxu1 %v5542_v4  ;;  %4951 = vmatpush3.bf16.msra.mxu0 %v4329_v40  ;;  %v5898_v40 = vsub.s32 3, %v5628_v15 }
 0x162   : > { %4953 = vmatprep.subr.bf16.mxu0 %v4338_v41 }
 0x163   : > { %3795 = vmatmul.mubr.msk.f32.vlgmr.msra.gmra.mrb[8].mxu1 %vm6863_vm8, %v5732_v50 }
 0x164   : > { %4926 = vmatpush3.bf16.msra.mxu1 %v5363_v25  ;;  %4669 = vmatprep.mubr.msk.f32.mxu1 %vm6865_vm6, %v5541_v55 }
 0x165   : > { %4927 = vmatprep.subr.bf16.mxu1 %v5542_v4  ;;  %4955 = vmatpush3.bf16.msra.mxu0 %v4330_v43  ;;  %v1025_v43 = vrot.slane %v5843_v9, %v5893_v38 }
 0x166   : > { %4957 = vmatprep.subr.bf16.mxu0 %v4339_v45 }
 0x168   : > { %4929 = vmatpush3.bf16.msra.mxu1 %v5364_v27 }
 0x169   : > { %4930 = vmatprep.subr.bf16.mxu1 %v5542_v4  ;;  %4959 = vmatpush3.bf16.msra.mxu0 %v4331_v47 }
 0x16c   : > { %4932 = vmatpush3.bf16.msra.mxu1 %v5365_v28 }
 0x16d   : > { %4933 = vmatprep.subr.bf16.mxu1 %v5542_v4 }
 0x170   : > { %4935 = vmatpush3.bf16.msra.mxu1 %v5366_v29 }
 0x171   : > { %4969 = vmatprep.subr.bf16.mxu1 %v4350_v42 }
 0x173   : > { %4670 = vmatmul.mubr.msk.f32.vlgmr.msra.gmra.mrb[10].mxu1 %vm6863_vm8, %v5732_v50  ;;  %v4340_v50 = vld [vmem:[%s5606_s12 + $0x70] sm:$0xff]  }
 0x174   : > { %4971 = vmatpush3.bf16.msra.mxu1 %v4342_v44  ;;  %4961 = vmatprep.subr.bf16.mxu0 %v4340_v50  ;;  %v1029_v44 = vrot.slane %v5843_v9, %v5898_v40 }
 0x175   : > { %4973 = vmatprep.subr.bf16.mxu1 %v4351_v46  ;;  %4963 = vmatpush3.bf16.msra.mxu0 %v4332_v53 }
 0x176   : > { %4965 = vmatprep.subr.bf16.mxu0 %v4341_v56 }
 0x178   : > { %4975 = vmatpush3.bf16.msra.mxu1 %v4343_v48 }
 0x179   : > { %4977 = vmatprep.subr.bf16.mxu1 %v4352_v51  ;;  %4967 = vmatpush3.bf16.msra.mxu0 %v4333_v58 }
 0x17a   : > { %5001 = vmatprep.subr.bf16.mxu0 %v4366_v61 }
 0x17c   : > { %4979 = vmatpush3.bf16.msra.mxu1 %v4344_v54 }
 0x17d   : > { %4981 = vmatprep.subr.bf16.mxu1 %v4353_v57 }
 0x180   : > { %4983 = vmatpush3.bf16.msra.mxu1 %v4345_v59 }
 0x181   : > { %4985 = vmatprep.subr.bf16.mxu1 %v4354_v60 }
 0x184   : > { %4987 = vmatpush3.bf16.msra.mxu1 %v4346_v62 }
 0x185   : > { %4989 = vmatprep.subr.bf16.mxu1 %v4355_v63 }
 0x188   : > { %4991 = vmatpush3.bf16.msra.mxu1 %v4347_v0 }
 0x189   : > { %4993 = vmatprep.subr.bf16.mxu1 %v4356_v1 }
 0x18c   : > { %4995 = vmatpush3.bf16.msra.mxu1 %v4348_v2  ;;  %v5949_v2 = vsub.s32 6, %v5628_v15 }
 0x18d   : > { %4997 = vmatprep.subr.bf16.mxu1 %v4357_v3 }
 0x190   : > { %4999 = vmatpush3.bf16.msra.mxu1 %v4349_v5 }
 0x191   : > { %5032 = vmatprep.subr.bf16.mxu1 %v5542_v4 }
 0x206   : > { %v1119_v16 = vpop.f32.mrb[2].mxu1  ;;  %v1261_v17 = vpop.f32.mrb[6].mxu0 }
 0x207   : > { %v5857_v18 = vadd.f32 %v1119_v16, %v1017_v11  ;;  %v5859_v19 = vadd.f32 %v1261_v17, %v1033_v12  ;;  %v1121_v21 = vpop.f32.mrb[3].mxu1  ;;  %v1263_v22 = vpop.f32.mrb[7].mxu0 }
 0x208   : > { %v5861_v23 = vadd.f32 %v1121_v21, %v1021_v13  ;;  %v5881_v33 = vadd.f32 %v1263_v22, %v1037_v24 }
 0x209   : > { %vm1657_vm9 = vcmp.lt.f32.partialorder %v5857_v18, 0.0  ;;  %v1671_v25 = vsub.f32 0.0, %v5857_v18  ;;  %vm1661_vm10 = vcmp.lt.f32.partialorder %v5859_v19, 0.0  ;;  %v1675_v27 = vsub.f32 0.0, %v5859_v19 }
 0x20a   : > { %v1672_v28 = vsub.f32 0.0, %v5861_v23  ;;  %vm1658_vm11 = vcmp.lt.f32.partialorder %v5861_v23, 0.0  ;;  %vm6867_vm12 = vcmp.lt.f32.partialorder %v5881_v33, 0.0  ;;  %v1676_v41 = vsub.f32 0.0, %v5881_v33 }
 0x20b   : > { %v5873_v29 = vsel %vm1657_vm9, %v1671_v25, %v5857_v18  ;;  %v5878_v32 = vsel %vm1661_vm10, %v1675_v27, %v5859_v19 }
 0x20c   : > { %5447 = vrcp.f32 %v5873_v29  ;;  %v1734_v35 = vadd.f32 1.0, %v5873_v29  ;;  %v1738_v36 = vadd.f32 1.0, %v5878_v32  ;;  %v5890_v37 = vsel %vm1658_vm11, %v1672_v28, %v5861_v23 }
 0x20d   : > { %5449 = vrcp.f32 %v5878_v32  ;;  %v1735_v39 = vadd.f32 1.0, %v5890_v37  ;;  %vm1685_vm13 = vcmp.gt.f32.partialorder %v5873_v29, 2.4142137  ;;  %v5906_v42 = vsel %vm6867_vm12, %v1676_v41, %v5881_v33 }
 0x20e   : > { %5451 = vrcp.f32 %v1734_v35  ;;  %vm1692_vm14 = vcmp.gt.f32.partialorder %v5873_v29, 0.41421357  ;;  %vm1699_vm0 = vmxor %vm1685_vm13, %vm5544_vm15  ;;  %v1739_v45 = vadd.f32 1.0, %v5906_v42  ;;  %vm1689_vm1 = vcmp.gt.f32.partialorder %v5878_v32, 2.4142137 }
 0x20f   : > { %5453 = vrcp.f32 %v1738_v36  ;;  %vm5921_vm2 = vmand %vm1692_vm14, %vm1699_vm0  ;;  %v3798_v57 = vadd.f32 -1.0, %v5873_v29  ;;  %vm1686_vm3 = vcmp.gt.f32.partialorder %v5890_v37, 2.4142137  ;;  %vm1696_vm4 = vcmp.gt.f32.partialorder %v5878_v32, 0.41421357 }
 0x210   : > { %5455 = vrcp.f32 %v5890_v37  ;;  %vm5937_vm5 = vmxor %vm1689_vm1, %vm5544_vm15  ;;  %v3802_v61 = vadd.f32 -1.0, %v5878_v32  ;;  %v1769_v1 = vsel %vm5921_vm2, 0.7853982, %v5541_v55  ;;  %vm1693_vm0 = vcmp.gt.f32.partialorder %v5890_v37, 0.41421357 }
 0x211   : > { %5457 = vrcp.f32 %v1735_v39  ;;  %vm5954_vm8 = vmxor %vm1686_vm3, %vm5544_vm15  ;;  %v3799_v13 = vadd.f32 -1.0, %v5890_v37  ;;  %vm1690_vm6 = vcmp.gt.f32.partialorder %v5906_v42, 2.4142137 }
 0x212   : > { %5459 = vrcp.f32 %v5906_v42  ;;  %vm5971_vm7 = vmand %vm1696_vm4, %vm5937_vm5  ;;  %vm1697_vm4 = vcmp.gt.f32.partialorder %v5906_v42, 0.41421357 }
 0x213   : > { %5461 = vrcp.f32 %v1739_v45  ;;  %v1773_v19 = vsel %vm5971_vm7, 0.7853982, %v5541_v55 }
 0x216   : > { %v1190_v46 = vpop.f32.mrb[4].mxu1  ;;  %v5919_v47 = vpop.f32.mrb[8].mxu0 }
 0x217   : > { %v5448_v48 = vpop.eup %5447  ;;  %v5925_v51 = vadd.f32 %v1190_v46, %v1025_v43  ;;  %v1192_v53 = vpop.f32.mrb[5].mxu1 }
 0x218   : > { %v5927_v54 = vpop.f32.mrb[9].mxu0  ;;  %v5450_v56 = vpop.eup %5449  ;;  %v5931_v58 = vadd.f32 %v1192_v53, %v1029_v44  ;;  %v1714_v5 = vmul.f32 -1.0, %v5448_v48 }
 0x219   : > { %v5452_v59 = vpop.eup %5451  ;;  %vm1659_vm14 = vcmp.lt.f32.partialorder %v5925_v51, 0.0  ;;  %v1673_v62 = vsub.f32 0.0, %v5925_v51  ;;  %v1722_v22 = vmul.f32 -1.0, %v5450_v56  ;;  %v3803_v56 = vadd.f32 -1.0, %v5906_v42 }
 0x21a   : > { %v5454_v63 = vpop.eup %5453  ;;  %v1742_v0 = vmul.f32 %v5452_v59, %v3798_v57  ;;  %vm1660_vm12 = vcmp.lt.f32.partialorder %v5931_v58, 0.0  ;;  %v1674_v28 = vsub.f32 0.0, %v5931_v58 }
 0x21b   : > { %v5456_v3 = vpop.eup %5455  ;;  %v1750_v11 = vmul.f32 %v5454_v63, %v3802_v61  ;;  %v5962_v16 = vsel %vm1659_vm14, %v1673_v62, %v5925_v51  ;;  %v1041_v62 = vrot.slane %v5843_v9, %v5949_v2  ;;  %v5545_v63 = vmov 1.0  }
 0x21c   : > { %v5458_v17 = vpop.eup %5457  ;;  %v1755_v15 = vsel %vm5921_vm2, %v1742_v0, %v5873_v29  ;;  %vm5997_vm2 = vmand %vm1693_vm0, %vm5954_vm8  ;;  %v1716_v41 = vmul.f32 -1.0, %v5456_v3  ;;  %v1736_v43 = vadd.f32 1.0, %v5962_v16  ;;  %5463 = vrcp.f32 %v5962_v16 }
 0x21d   : > { %v5979_v24 = vsel %vm1685_vm13, %v1714_v5, %v1755_v15  ;;  %v1759_v25 = vsel %vm5971_vm7, %v1750_v11, %v5878_v32  ;;  %v1744_v27 = vmul.f32 %v5458_v17, %v3799_v13  ;;  %v5460_v46 = vpop.eup %5459  ;;  %vm6019_vm8 = vmxor %vm1690_vm6, %vm5544_vm15  ;;  %v6032_v61 = vsel %vm1660_vm12, %v1674_v28, %v5931_v58 }
 0x21e   : > { %v5987_v35 = vmul.f32 %v5979_v24, %v5979_v24  ;;  %v5991_v36 = vsel %vm1689_vm1, %v1722_v22, %v1759_v25  ;;  %5465 = vrcp.f32 %v1736_v43  ;;  %v5462_v57 = vpop.eup %5461  ;;  %v6039_v0 = vsel %vm1657_vm9, -1.0, %v5545_v63  ;;  %vm6055_vm9 = vmand %vm1697_vm4, %vm6019_vm8 }
 0x21f   : > { %v6004_v44 = vmul.f32 %v5991_v36, %v5991_v36  ;;  %v1756_v45 = vsel %vm5997_vm2, %v1744_v27, %v5890_v37  ;;  %v6043_v3 = vsel %vm1685_vm13, 1.5707964, %v1769_v1  ;;  %v1752_v11 = vmul.f32 %v5462_v57, %v3803_v56 }
 0x220   : > { %v1790_v48 = vmul.f32 0.080537446, %v5987_v35  ;;  %v6014_v50 = vsel %vm1686_vm3, %v1716_v41, %v1756_v45  ;;  %v6048_v12 = vsel %vm1661_vm10, -1.0, %v5545_v63  ;;  %v1724_v29 = vmul.f32 -1.0, %v5460_v46 }
 0x221   : > { %v1794_v59 = vmul.f32 0.080537446, %v6004_v44  ;;  %v6027_v60 = vmul.f32 %v6014_v50, %v6014_v50  ;;  %v1760_v17 = vsel %vm6055_vm9, %v1752_v11, %v5906_v42  ;;  %v1737_v15 = vadd.f32 1.0, %v6032_v61 }
 0x222   : > { %v3805_v5 = vadd.f32 -0.13877685, %v1790_v48  ;;  %v6070_v27 = vsel %vm1690_vm6, %v1724_v29, %v1760_v17  ;;  %5467 = vrcp.f32 %v6032_v61  ;;  %vm1687_vm7 = vcmp.gt.f32.partialorder %v5962_v16, 2.4142137 }
 0x223   : > { %v3809_v13 = vadd.f32 -0.13877685, %v1794_v59  ;;  %v1791_v9 = vmul.f32 0.080537446, %v6027_v60  ;;  %v6075_v21 = vmul.f32 %v6070_v27, %v6070_v27  ;;  %5469 = vrcp.f32 %v1737_v15  ;;  %vm1701_vm13 = vmxor %vm1687_vm7, %vm5544_vm15 }
 0x224   : > { %v1804_v1 = vmul.f32 %v3805_v5, %v5987_v35  ;;  %v1780_v45 = vsel %vm1689_vm1, 1.5707964, %v1773_v19  ;;  %v1770_v5 = vsel %vm5997_vm2, 0.7853982, %v5541_v55  ;;  %vm1694_vm10 = vcmp.gt.f32.partialorder %v5962_v16, 0.41421357 }
 0x225   : > { %v1808_v22 = vmul.f32 %v3809_v13, %v6004_v44  ;;  %v3806_v25 = vadd.f32 -0.13877685, %v1791_v9  ;;  %v1795_v11 = vmul.f32 0.080537446, %v6075_v21  ;;  %v1665_v39 = vsel %vm1658_vm11, -1.0, %v5545_v63  ;;  %vm6111_vm5 = vmand %vm1694_vm10, %vm1701_vm13 }
 0x226   : > { %v1811_v28 = vadd.f32 0.19977711, %v1804_v1  ;;  %v1332_v41 = vpop.f32.mrb[6].mxu1  ;;  %v6078_v43 = vpop.f32.mrb[10].mxu0  ;;  %vm1688_vm11 = vcmp.gt.f32.partialorder %v6032_v61, 2.4142137 }
 0x227   : > { %v1815_v46 = vadd.f32 0.19977711, %v1808_v22  ;;  %v1805_v48 = vmul.f32 %v3806_v25, %v6027_v60  ;;  %v6083_v53 = vadd.f32 %v1332_v41, %v1041_v62  ;;  %v4652_v56 = vpop.f32.mrb[7].mxu1  ;;  %v6085_v57 = vpop.f32.mrb[11].mxu0  ;;  %v3800_v62 = vadd.f32 -1.0, %v5962_v16  ;;  %vm1702_vm4 = vmxor %vm1688_vm11, %vm5544_vm15 }
 0x228   : > { %v1818_v59 = vmul.f32 %v1811_v28, %v5987_v35  ;;  %v5464_v32 = vpop.eup %5463  ;;  %v3810_v17 = vadd.f32 -0.13877685, %v1795_v11  ;;  %v1774_v25 = vsel %vm6055_vm9, 0.7853982, %v5541_v55  ;;  %vm6869_vm0 = vcmask 1041408  }
 0x229   : > { %v1822_v13 = vmul.f32 %v1815_v46, %v6004_v44  ;;  %v1812_v9 = vadd.f32 0.19977711, %v1805_v48  ;;  %v1677_v29 = vsub.f32 0.0, %v6083_v53  ;;  %v5466_v1 = vpop.eup %5465  ;;  %vm1663_vm1 = vcmp.lt.f32.partialorder %v6083_v53, 0.0 }
 0x22a   : > { %v3812_v19 = vadd.f32 -0.3333295, %v1818_v59  ;;  %v1746_v28 = vmul.f32 %v5466_v1, %v3800_v62  ;;  %v1809_v46 = vmul.f32 %v3810_v17, %v6075_v21  ;;  %v1718_v48 = vmul.f32 -1.0, %v5464_v32 }
 0x22b   : > { %v3816_v15 = vadd.f32 -0.3333295, %v1822_v13  ;;  %v1819_v22 = vmul.f32 %v1812_v9, %v6027_v60  ;;  %vm1695_vm2 = vcmp.gt.f32.partialorder %v6032_v61, 0.41421357  ;;  %vm6889_vm9 = vcmp.lt.f32.partialorder %v5881_v33, 0.0 }
 0x22c   : > { %v1832_v41 = vmul.f32 %v3812_v19, %v5987_v35  ;;  %v1757_v18 = vsel %vm6111_vm5, %v1746_v28, %v5962_v16  ;;  %v6123_v35 = vsel %vm1663_vm1, %v1677_v29, %v6083_v53  ;;  %v1816_v13 = vadd.f32 0.19977711, %v1809_v46  ;;  %vm6148_vm8 = vmand %vm1695_vm2, %vm1702_vm4 }
 0x22d   : > { %v1836_v56 = vmul.f32 %v3816_v15, %v6004_v44  ;;  %v3813_v59 = vadd.f32 -0.3333295, %v1819_v22  ;;  %v6128_v32 = vsel %vm1687_vm7, %v1718_v48, %v1757_v18  ;;  %v5468_v44 = vpop.eup %5467  ;;  %v3801_v29 = vadd.f32 -1.0, %v6032_v61 }
 0x22e   : > { %v1839_v11 = vmul.f32 %v1832_v41, %v5979_v24  ;;  %v1785_v1 = vmul.f32 %v6128_v32, %v6128_v32  ;;  %v5470_v19 = vpop.eup %5469  ;;  %v1823_v15 = vmul.f32 %v1816_v13, %v6075_v21  ;;  %5471 = vrcp.f32 %v6123_v35 }
 0x22f   : > { %v1843_v9 = vmul.f32 %v1836_v56, %v5991_v36  ;;  %v1833_v62 = vmul.f32 %v3813_v59, %v6027_v60  ;;  %v1740_v22 = vadd.f32 1.0, %v6123_v35  ;;  %v1748_v46 = vmul.f32 %v5470_v19, %v3801_v29 }
 0x230   : > { %v1846_v17 = vadd.f32 %v1839_v11, %v5979_v24  ;;  %v1792_v41 = vmul.f32 0.080537446, %v1785_v1  ;;  %v3817_v56 = vadd.f32 -0.3333295, %v1823_v15  ;;  %v1720_v24 = vmul.f32 -1.0, %v5468_v44 }
 0x231   : > { %v1850_v60 = vadd.f32 %v1843_v9, %v5991_v36  ;;  %v1840_v28 = vmul.f32 %v1833_v62, %v6014_v50  ;;  %5473 = vrcp.f32 %v1740_v22  ;;  %v1758_v36 = vsel %vm6148_vm8, %v1748_v46, %v6032_v61 }
 0x232   : > { %v1853_v48 = vadd.f32 %v1846_v17, %v6043_v3  ;;  %v3807_v13 = vadd.f32 -0.13877685, %v1792_v41  ;;  %v1777_v3 = vsel %vm1686_vm3, 1.5707964, %v1770_v5  ;;  %v1837_v62 = vmul.f32 %v3817_v56, %v6075_v21 }
 0x233   : > { %v1857_v18 = vadd.f32 %v1850_v60, %v1780_v45  ;;  %v1847_v11 = vadd.f32 %v1840_v28, %v6014_v50  ;;  %v6162_v29 = vsel %vm1688_vm11, %v1720_v24, %v1758_v36  ;;  %v1781_v37 = vsel %vm1690_vm6, 1.5707964, %v1774_v25 }
 0x234   : > { %v1860_v9 = vmul.f32 %v1853_v48, %v6039_v0  ;;  %v1806_v50 = vmul.f32 %v3807_v13, %v1785_v1  ;;  %v1786_v19 = vmul.f32 %v6162_v29, %v6162_v29  ;;  %v1669_v0 = vsel %vm6889_vm9, -1.0, %v5545_v63 }
 0x235   : > { %v1864_v45 = vmul.f32 %v1857_v18, %v6048_v12  ;;  %v1854_v44 = vadd.f32 %v1847_v11, %v1777_v3  ;;  %v1844_v21 = vmul.f32 %v1837_v62, %v6070_v27  ;;  %vm1691_vm3 = vcmp.gt.f32.partialorder %v6123_v35, 2.4142137 }
 0x236   : > { %v1867_v17 = vmul.f32 0.636, %v1860_v9  ;;  %v6173_v5 = vpop.f32.mrb[8].mxu1  ;;  %v1813_v22 = vadd.f32 0.19977711, %v1806_v50  ;;  %v3804_v18 = vadd.f32 -1.0, %v6123_v35  ;;  %vm1705_vm10 = vmxor %vm1691_vm3, %vm5544_vm15 }
 0x237   : > { %v6175_v15 = vmul.f32 0.636, %v1864_v45  ;;  %v1861_v12 = vmul.f32 %v1854_v44, %v1665_v39  ;;  %v1793_v60 = vmul.f32 0.080537446, %v1786_v19  ;;  %v1851_v46 = vadd.f32 %v1844_v21, %v6070_v27  ;;  %v6180_v33 = vpop.f32.mrb[9].mxu1 }
 0x238   : > { %v1874_v28 = vmul.f32 1.442695, %v1867_v17  ;;  %v3516_v41 = vsel %vm6869_vm0, %v1867_v17, 0.0  ;;  %v1820_v48 = vmul.f32 %v1813_v22, %v1785_v1  ;;  %v5472_v24 = vpop.eup %5471  ;;  %vm1698_vm6 = vcmp.gt.f32.partialorder %v6123_v35, 0.41421357 }
 0x239   : > { %v1882_v42 = vmul.f32 1.442695, %v6175_v15  ;;  %v1868_v25 = vmul.f32 0.636, %v1861_v12  ;;  %v3808_v56 = vadd.f32 -0.13877685, %v1793_v60  ;;  %v1858_v39 = vadd.f32 %v1851_v46, %v1781_v37  ;;  %vm6196_vm13 = vmand %vm1698_vm6, %vm1705_vm10 }
 0x23a   : > { %5475 = vpow2.f32 %v1874_v28  ;;  %v3814_v13 = vadd.f32 -0.3333295, %v1820_v48  ;;  %v6190_v44 = vld [vmem:[%s5601_s8 + $0x15] sm:$0x7f]  ;;  %v1726_v12 = vmul.f32 -1.0, %v5472_v24  ;;  %v1667_v61 = vsel %vm1660_vm12, -1.0, %v5545_v63 }
 0x23b   : > { %5477 = vpow2.f32 %v1882_v42  ;;  %v1876_v11 = vmul.f32 1.442695, %v1868_v25  ;;  %v3517_v27 = vsel %vm6869_vm0, %v1868_v25, 0.0  ;;  %v5474_v36 = vpop.eup %5473  ;;  %v1865_v3 = vmul.f32 %v1858_v39, %v1669_v0 }
 0x23c   : > { %v3518_v9 = vadd.f32 %v3517_v27, %v3516_v41  ;;  %v1807_v62 = vmul.f32 %v3808_v56, %v1786_v19  ;;  %v1834_v45 = vmul.f32 %v3814_v13, %v1785_v1  ;;  %v1754_v50 = vmul.f32 %v5474_v36, %v3804_v18 }
 0x23d   : > { %5479 = vpow2.f32 %v1876_v11  ;;  %v6192_v17 = vmul.f32 0.636, %v1865_v3  ;;  %v1771_v0 = vsel %vm6111_vm5, 0.7853982, %v5541_v55  ;;  %v1342_v28 = vrot.slane %v6190_v44, %v5837_v7 }
 0x23e   : > { %v1814_v37 = vadd.f32 0.19977711, %v1807_v62  ;;  %v1841_v22 = vmul.f32 %v1834_v45, %v6128_v32  ;;  %v1761_v1 = vsel %vm6196_vm13, %v1754_v50, %v6123_v35  ;;  %v1778_v25 = vsel %vm1687_vm7, 1.5707964, %v1771_v0 }
 0x23f   : > { %v1884_v60 = vmul.f32 1.442695, %v6192_v17  ;;  %v6212_v46 = vsel %vm1691_vm3, %v1726_v12, %v1761_v1  ;;  %v1358_v56 = vrot.slane %v6190_v44, %v5840_v8  ;;  %v1346_v39 = vrot.slane %v6190_v44, %v5846_v10 }
 0x240   : > { %v1821_v41 = vmul.f32 %v1814_v37, %v1786_v19  ;;  %v1848_v42 = vadd.f32 %v1841_v22, %v6128_v32  ;;  %v1789_v23 = vmul.f32 %v6212_v46, %v6212_v46  ;;  %v1666_v32 = vsel %vm1659_vm14, -1.0, %v5545_v63 }
 0x241   : > { %5481 = vpow2.f32 %v1884_v60  ;;  %v1441_v27 = vadd.f32 %v5919_v47, %v1342_v28  ;;  %v1772_v62 = vsel %vm6148_vm8, 0.7853982, %v5541_v55  ;;  %v1583_v37 = vadd.f32 %v6078_v43, %v1358_v56 }
 0x242   : > { %v3815_v48 = vadd.f32 -0.3333295, %v1821_v41  ;;  %v1855_v24 = vadd.f32 %v1848_v42, %v1778_v25  ;;  %v1796_v18 = vmul.f32 0.080537446, %v1789_v23  ;;  %v1443_v22 = vadd.f32 %v5927_v54, %v1346_v39 }
 0x243   : > { %v1779_v59 = vsel %vm1688_vm11, 1.5707964, %v1772_v62  ;;  %v1362_v54 = vrot.slane %v6190_v44, %v5855_v14  ;;  %vm6868_vm12 = vcmask 123904   ;;  %v1354_v53 = vrot.slane %v6190_v44, %v5898_v40 }
 0x244   : > { %v5476_v11 = vpop.eup %5475  ;;  %v1835_v13 = vmul.f32 %v3815_v48, %v1786_v19  ;;  %v1862_v16 = vmul.f32 %v1855_v24, %v1666_v32  ;;  %v3811_v45 = vadd.f32 -0.13877685, %v1796_v18  ;;  %v4367_v18 = vld [vmem:[%s5606_s12 + $0x148] sm:$0xff]   ;;  %vm6892_vm14 = vmmov 0  }
 0x245   : > { %v5478_v36 = vpop.eup %5477  ;;  %v1889_v3 = vmul.f32 %v5476_v11, %v5642_v26  ;;  %v1585_v32 = vadd.f32 %v6085_v57, %v1362_v54  ;;  %v1775_v57 = vsel %vm6196_vm13, 0.7853982, %v5541_v55  ;;  %vm6893_vm7 = vcmask 130048  }
 0x246   : > { %v1842_v50 = vmul.f32 %v1835_v13, %v6162_v29  ;;  %v1893_v12 = vmul.f32 %v5478_v36, %v5675_v49  ;;  %v6234_v51 = vpop.f32.mrb[10].mxu1  ;;  %v1869_v47 = vmul.f32 0.636, %v1862_v16  ;;  %v1810_v26 = vmul.f32 %v3811_v45, %v1789_v23  ;;  %v4359_v36 = vld [vmem:[%s5606_s12 + $0x108] sm:$0xff]  }
 0x247   : > { %v5480_v0 = vpop.eup %5479  ;;  %v6236_v19 = vadd.f32 %v1889_v3, %v1441_v27  ;;  %v4671_v1 = vpop.f32.mrb[11].mxu1  ;;  %v4368_v3 = vld [vmem:[%s5606_s12 + $0x150] sm:$0xff]  }
 0x248   : > { %v1849_v60 = vadd.f32 %v1842_v50, %v6162_v29  ;;  %v1890_v43 = vmul.f32 %v5480_v0, %v5648_v30  ;;  %v6243_v49 = vadd.f32 %v1893_v12, %v1583_v37  ;;  %v1878_v28 = vmul.f32 1.442695, %v1869_v47  ;;  %v4358_v29 = vld [vmem:[%s5606_s12 + $0x100] sm:$0xff]   ;;  %v4360_v12 = vld [vmem:[%s5606_s12 + $0x110] sm:$0xff]  }
 0x249   : > { %v3519_v41 = vsel %vm6869_vm0, %v1869_v47, 0.0  ;;  %v1817_v42 = vadd.f32 0.19977711, %v1810_v26  ;;  %v3523_v50 = vsel %vm6869_vm0, %v6175_v15, 0.0  ;;  %v1782_v0 = vsel %vm1691_vm3, 1.5707964, %v1775_v57 }
 0x24a   : > { %v1856_v25 = vadd.f32 %v1849_v60, %v1779_v59  ;;  %v6248_v48 = vadd.f32 %v1890_v43, %v1443_v22  ;;  %v3520_v56 = vadd.f32 %v3519_v41, %v3518_v9  ;;  %5483 = vpow2.f32 %v1878_v28  ;;  %v4369_v47 = vld [vmem:[%s5606_s12 + $0x158] sm:$0xff]  }
 0x24b   : > { %v1824_v30 = vmul.f32 %v1817_v42, %v1789_v23  ;;  %v5482_v24 = vpop.eup %5481  ;;  %v3525_v22 = vsel %vm6869_vm0, %v6192_v17, 0.0  ;;  %v1670_v15 = vsel %vm1663_vm1, -1.0, %v5545_v63  ;;  %v4361_v43 = vld [vmem:[%s5606_s12 + $0x118] sm:$0xff]   ;;  %v4370_v17 = vld [vmem:[%s5606_s12 + $0x160] sm:$0xff]   ;;  %vm6894_vm1 = vcmask 523264  }
 0x24c   : > { %v1863_v39 = vmul.f32 %v1856_v25, %v1667_v61  ;;  %2167 = vmatprep.mubr.f32.mxu0 %v6248_v48  ;;  %v1894_v27 = vmul.f32 %v5482_v24, %v5681_v52  ;;  %v4371_v25 = vld [vmem:[%s5606_s12 + $0x168] sm:$0xff]   ;;  %v1514_v61 = vadd.f32 %v6180_v33, %v1354_v53  ;;  %v4373_v33 = vld [vmem:[%s5606_s12 + $0x178] sm:$0xff]   ;;  %vm6895_vm5 = vmmov %vm6894_vm1 }
 0x24d   : > { %v3818_v11 = vadd.f32 -0.3333295, %v1824_v30  ;;  %2168 = vmatmul.mubr.f32.vlgmr.msra.gmra.mrb[12].mxu0 %v6236_v19  ;;  %v4363_v24 = vld [vmem:[%s5606_s12 + $0x128] sm:$0xff]   ;;  %v5375_v57 = vld [vmem:[%s5611_s15 + $0x38] ss:$28 sps:$4 sm:$0xff]   ;;  %vm6896_vm11 = vmmov %vm6894_vm1 }
 0x24e   : > { %v1870_v9 = vmul.f32 0.636, %v1863_v39  ;;  %5003 = vmatpush3.bf16.msra.mxu0 %v4358_v29  ;;  %v6259_v13 = vadd.f32 %v1894_v27, %v1585_v32  ;;  %v4372_v39 = vld [vmem:[%s5606_s12 + $0x170] sm:$0xff]   ;;  %v4365_v27 = vld [vmem:[%s5606_s12 + $0x138] sm:$0xff]   ;;  %vm6897_vm2 = vmmov %vm6894_vm1 }
 0x24f   : > { %v1838_v58 = vmul.f32 %v3818_v11, %v1789_v23  ;;  %5005 = vmatprep.subr.bf16.mxu0 %v4367_v18  ;;  %v1350_v23 = vrot.slane %v6190_v44, %v5893_v38  ;;  %v4374_v18 = vld [vmem:[%s5606_s12 + $0x180] sm:$0xff]   ;;  %v4364_v11 = vld [vmem:[%s5606_s12 + $0x130] sm:$0xff]   ;;  %vm6898_vm4 = vmmov %vm6894_vm1 }
 0x250   : > { %v1880_v16 = vmul.f32 1.442695, %v1870_v9  ;;  %v3521_v62 = vsel %vm6869_vm0, %v1870_v9, 0.0  ;;  %2307 = vmatprep.mubr.f32.mxu0 %v6259_v13  ;;  %vm6899_vm8 = vmmov %vm6894_vm1 }
 0x251   : > { %v1845_v52 = vmul.f32 %v1838_v58, %v6212_v46  ;;  %v3522_v45 = vadd.f32 %v3521_v62, %v3520_v56  ;;  %v5376_v62 = vld [vmem:[%s5611_s15 + $0x4c] ss:$28 sps:$4 sm:$0xff]   ;;  %vm6900_vm9 = vmmov %vm6894_vm1 }
 0x252   : > { %5485 = vpow2.f32 %v1880_v16  ;;  %5007 = vmatpush3.bf16.msra.mxu0 %v4359_v36  ;;  %v5369_v16 = vld [vmem:[%s5611_s15] ss:$28 sps:$4 sm:$0xff]   ;;  %vm6901_vm3 = vmmov %vm6894_vm1 }
 0x253   : > { %v1852_v37 = vadd.f32 %v1845_v52, %v6212_v46  ;;  %5009 = vmatprep.subr.bf16.mxu0 %v4368_v3  ;;  %v3524_v21 = vadd.f32 %v3523_v50, %v3522_v45  ;;  %v1512_v46 = vadd.f32 %v6173_v5, %v1350_v23  ;;  %v5373_v3 = vld [vmem:[%s5611_s15 + $0x3c] ss:$28 sps:$4 sm:$0xff]   ;;  %v5378_v52 = vld [vmem:[%s5611_s15 + $0x48] ss:$28 sps:$4 sm:$0xff]   ;;  %v5379_v45 = vld [vmem:[%s5611_s15 + $0x74] ss:$28 sps:$4 sm:$0xff]  }
 0x254   : > { %v5484_v26 = vpop.eup %5483  ;;  %v5382_v23 = vld [vmem:[%s5611_s15 + $0x84] ss:$28 sps:$4 sm:$0xff]   ;;  %v5381_v50 = vld [vmem:[%s5611_s15 + $0x70] ss:$28 sps:$4 sm:$0xff]  }
 0x255   : > { %v1859_v1 = vadd.f32 %v1852_v37, %v1782_v0  ;;  %v3526_v59 = vadd.f32 %v3525_v22, %v3524_v21  ;;  %v1891_v60 = vmul.f32 %v5484_v26, %v5651_v31  ;;  %v4362_v31 = vld [vmem:[%s5606_s12 + $0x120] sm:$0xff]   ;;  %v5388_v0 = vld [vmem:[%s5611_s15 + $0xbc] ss:$28 sps:$4 sm:$0xff]   ;;  %v5391_v22 = vld [vmem:[%s5611_s15 + $0xc] ss:$28 sps:$4 sm:$0xff]  }
 0x256   : > { %5011 = vmatpush3.bf16.msra.mxu0 %v4360_v12  ;;  %v5384_v37 = vld [vmem:[%s5611_s15 + $0x80] ss:$28 sps:$4 sm:$0xff]   ;;  %v5385_v12 = vld [vmem:[%s5611_s15 + $0xac] ss:$28 sps:$4 sm:$0xff]  }
 0x257   : > { %v1866_v35 = vmul.f32 %v1859_v1, %v1670_v15  ;;  %5013 = vmatprep.subr.bf16.mxu0 %v4369_v47  ;;  %v6286_v28 = vadd.f32 %v1891_v60, %v1512_v46  ;;  %v5387_v21 = vld [vmem:[%s5611_s15 + $0xa8] ss:$28 sps:$4 sm:$0xff]   ;;  %v5390_v47 = vld [vmem:[%s5611_s15 + $0xb8] ss:$28 sps:$4 sm:$0xff]   ;;  %v2099_v46 = vld [vmem:[%s5596_s28] sm:$0x3] }
 0x258   : > { %v5394_v26 = vld [vmem:[%s5611_s15 + $0xe4] ss:$28 sps:$4 sm:$0xff]  }
 0x259   : > { %v1873_v41 = vmul.f32 0.636, %v1866_v35 }
 0x25a   : > { %5015 = vmatpush3.bf16.msra.mxu0 %v4361_v43 }
 0x25b   : > { %v1886_v5 = vmul.f32 1.442695, %v1873_v41  ;;  %5017 = vmatprep.subr.bf16.mxu0 %v4370_v17  ;;  %v3527_v42 = vsel %vm6868_vm12, %v1873_v41, 0.0 }
 0x25c   : > { %v5486_v54 = vpop.eup %5485  ;;  %v6294_v56 = vadd.f32 %v3527_v42, %v3526_v59 }
 0x25d   : > { %5487 = vpow2.f32 %v1886_v5  ;;  %v1892_v30 = vmul.f32 %v5486_v54, %v5657_v34  ;;  %v1366_v34 = vrot.slane %v6190_v44, %v5949_v2  ;;  %v5367_v44 = vld [vmem:[%s5611_s15 + $0x4] ss:$28 sps:$4 sm:$0xff]  }
 0x25e   : > { %5019 = vmatpush3.bf16.msra.mxu0 %v4362_v31 }
 0x25f   : > { %v6298_v29 = vadd.f32 %v1892_v30, %v1514_v61  ;;  %5021 = vmatprep.subr.bf16.mxu0 %v4371_v25  ;;  %v1654_v9 = vadd.f32 %v6234_v51, %v1366_v34  ;;  %v5370_v51 = vld [vmem:[%s5611_s15 + $0x14] ss:$28 sps:$4 sm:$0xff]   ;;  %v5393_v30 = vld [vmem:[%s5611_s15 + $0x8] ss:$28 sps:$4 sm:$0xff]   ;;  %v5399_v34 = vld [vmem:[%s5611_s15 + $0x40] ss:$28 sps:$4 sm:$0xff]  }
 0x261   : > { %2237 = vmatprep.mubr.f32.mxu1 %v6298_v29 }
 0x262   : > { %2238 = vmatmul.mubr.f32.vlgmr.msra.gmra.mrb[12].mxu1 %v6286_v28  ;;  %5023 = vmatpush3.bf16.msra.mxu0 %v4363_v24  ;;  %v5396_v24 = vld [vmem:[%s5611_s15 + $0xe0] ss:$28 sps:$4 sm:$0xff]  }
 0x263   : > { %5025 = vmatprep.subr.bf16.mxu0 %v4372_v39  ;;  %5034 = vmatpush3.bf16.msra.mxu1 %v4374_v18  ;;  %v5397_v18 = vld [vmem:[%s5611_s15 + $0x44] ss:$28 sps:$4 sm:$0xff]  }
 0x264   : > { %4676 = vmatprep.mubr.msk.f32.mxu1 %vm6892_vm14, %v5541_v55  ;;  %5036 = vmatprep.subr.bf16.mxu1 %v5367_v44  ;;  %v5409_v44 = vld [vmem:[%s5611_s15 + $0xb4] ss:$28 sps:$4 sm:$0xff]  }
 0x266   : > { %5027 = vmatpush3.bf16.msra.mxu0 %v4364_v11  ;;  %v5400_v11 = vld [vmem:[%s5611_s15 + $0x11c] ss:$28 sps:$4 sm:$0xff]  }
 0x267   : > { %v5488_v32 = vpop.eup %5487  ;;  %5029 = vmatprep.subr.bf16.mxu0 %v4373_v33  ;;  %v5402_v33 = vld [vmem:[%s5611_s15 + $0x118] ss:$28 sps:$4 sm:$0xff]  }
 0x268   : > { %v1895_v58 = vmul.f32 %v5488_v32, %v5704_v6  ;;  %v5372_v6 = vld [vmem:[%s5611_s15 + $0x10] ss:$28 sps:$4 sm:$0xff]   ;;  %v5403_v32 = vld [vmem:[%s5611_s15 + $0x7c] ss:$28 sps:$4 sm:$0xff]  }
 0x26a   : > { %v6314_v36 = vadd.f32 %v1895_v58, %v1654_v9  ;;  %5031 = vmatpush3.bf16.msra.mxu0 %v4365_v27  ;;  %v5406_v27 = vld [vmem:[%s5611_s15 + $0x154] ss:$28 sps:$4 sm:$0xff]  }
 0x26b   : > { %5068 = vmatprep.subr.bf16.mxu0 %v5370_v51  ;;  %v5405_v9 = vld [vmem:[%s5611_s15 + $0x78] ss:$28 sps:$4 sm:$0xff]   ;;  %v5408_v58 = vld [vmem:[%s5611_s15 + $0x150] ss:$28 sps:$4 sm:$0xff]  }
 0x26c   : > { %4677 = vmatmul.mubr.msk.f32.vlgmr.msra.gmra.mrb[14].mxu1 %vm6893_vm7, %v6314_v36  ;;  %v5411_v51 = vld [vmem:[%s5611_s15 + $0xb0] ss:$28 sps:$4 sm:$0xff]  }
 0x26d   : > { %2308 = vmatmul.mubr.f32.vlgmr.msra.gmra.mrb[14].mxu0 %v6243_v49  ;;  %2665 = vmatprep.mubr.f32.mxu1 %v5541_v55 }
 0x26e   : > { %2807 = vmatprep.mubr.f32.mxu0 %v5541_v55  ;;  %5038 = vmatpush1.bf16.msra.mxu1 %v5369_v16  ;;  %v5412_v16 = vld [vmem:[%s5611_s15 + $0x18c] ss:$28 sps:$4 sm:$0xff]  }
 0x26f   : > { %5070 = vmatpush1.bf16.msra.mxu0 %v5372_v6  ;;  %5040 = vmatprep.subr.bf16.mxu1 %v5373_v3  ;;  %v5414_v6 = vld [vmem:[%s5611_s15 + $0x188] ss:$28 sps:$4 sm:$0xff]   ;;  %v5415_v3 = vld [vmem:[%s5611_s15 + $0xf4] ss:$28 sps:$4 sm:$0xff]  }
 0x270   : > { %5072 = vmatprep.subr.bf16.mxu0 %v5376_v62  ;;  %v5417_v62 = vld [vmem:[%s5611_s15 + $0xf0] ss:$28 sps:$4 sm:$0xff]  }
 0x272   : > { %5042 = vmatpush1.bf16.msra.mxu1 %v5375_v57  ;;  %v5418_v57 = vld [vmem:[%s5611_s15 + $0x18] ss:$28 sps:$4 sm:$0xff]  }
 0x273   : > { %5074 = vmatpush1.bf16.msra.mxu0 %v5378_v52  ;;  %5044 = vmatprep.subr.bf16.mxu1 %v5379_v45  ;;  %v5419_v52 = vld [vmem:[%s5611_s15 + $0x12c] ss:$28 sps:$4 sm:$0xff]  }
 0x274   : > { %5076 = vmatprep.subr.bf16.mxu0 %v5382_v23  ;;  %v5421_v45 = vld [vmem:[%s5611_s15 + $0x128] ss:$28 sps:$4 sm:$0xff]   ;;  %v5422_v23 = vld [vmem:[%s5611_s15 + $0x50] ss:$28 sps:$4 sm:$0xff]  }
 0x276   : > { %5046 = vmatpush1.bf16.msra.mxu1 %v5381_v50  ;;  %v5423_v50 = vld [vmem:[%s5611_s15 + $0x164] ss:$28 sps:$4 sm:$0xff]  }
 0x277   : > { %5078 = vmatpush1.bf16.msra.mxu0 %v5384_v37  ;;  %5048 = vmatprep.subr.bf16.mxu1 %v5385_v12  ;;  %v5425_v37 = vld [vmem:[%s5611_s15 + $0x160] ss:$28 sps:$4 sm:$0xff]   ;;  %v5426_v12 = vld [vmem:[%s5611_s15 + $0x88] ss:$28 sps:$4 sm:$0xff]  }
 0x278   : > { %5080 = vmatprep.subr.bf16.mxu0 %v5388_v0  ;;  %v5429_v0 = vld [vmem:[%s5611_s15 + $0x198] ss:$28 sps:$4 sm:$0xff]  }
 0x27a   : > { %5050 = vmatpush1.bf16.msra.mxu1 %v5387_v21  ;;  %v5427_v21 = vld [vmem:[%s5611_s15 + $0x19c] ss:$28 sps:$4 sm:$0xff]  }
 0x27b   : > { %5082 = vmatpush1.bf16.msra.mxu0 %v5390_v47  ;;  %5052 = vmatprep.subr.bf16.mxu1 %v5391_v22  ;;  %v5430_v47 = vld [vmem:[%s5611_s15 + $0xc0] ss:$28 sps:$4 sm:$0xff]   ;;  %v5431_v22 = vld [vmem:[%s5611_s15 + $0xec] ss:$28 sps:$4 sm:$0xff]  }
 0x27c   : > { %5096 = vmatprep.subr.bf16.mxu0 %v5394_v26  ;;  %v5433_v26 = vld [vmem:[%s5611_s15 + $0xe8] ss:$28 sps:$4 sm:$0xff]  }
 0x320   : > { %v4533_v1 = vpop.f32.mrb[12].mxu0 }
 0x321   : > { %v4534_v59 = vpop.f32.mrb[13].mxu0 }
 0x322   : > { %v4535_v15 = vadd.f32 %v4534_v59, %v4533_v1  ;;  %v5434_v1 = vld [vmem:[%s5611_s15 + $0x124] ss:$28 sps:$4 sm:$0xff]  }
 0x323   : > { %v5436_v59 = vld [vmem:[%s5611_s15 + $0x120] ss:$28 sps:$4 sm:$0xff]  }
 0x324   : > { %v2170_v43 = vadd.f32 %v4535_v15, %v2099_v46  ;;  %v5437_v15 = vld [vmem:[%s5611_s15 + $0x15c] ss:$28 sps:$4 sm:$0xff]  }
 0x325   : > { %v5439_v46 = vld [vmem:[%s5611_s15 + $0x158] ss:$28 sps:$4 sm:$0xff]  }
 0x335   : > { %v4568_v60 = vpop.f32.mrb[12].mxu1 }
 0x336   : > { %v4569_v35 = vpop.f32.mrb[13].mxu1 }
 0x337   : > { %v4570_v17 = vadd.f32 %v4569_v35, %v4568_v60  ;;  %v5440_v60 = vld [vmem:[%s5611_s15 + $0x194] ss:$28 sps:$4 sm:$0xff]  }
 0x338   : > { %v5442_v35 = vld [vmem:[%s5611_s15 + $0x190] ss:$28 sps:$4 sm:$0xff]  }
 0x339   : > { %v2240_v41 = vadd.f32 %v4570_v17, %v2170_v43  ;;  %v5443_v43 = vld [vmem:[%s5611_s15 + $0xf8] ss:$28 sps:$4 sm:$0xff]   ;;  %v5444_v17 = vld [vmem:[%s5611_s15 + $0x130] ss:$28 sps:$4 sm:$0xff]  }
 0x33f   : > { %v2379_v53 = vpop.f32.mrb[14].mxu1 }
 0x340   : > { %v4678_v5 = vpop.f32.mrb[15].mxu1  ;;  %v4603_v31 = vpop.f32.mrb[14].mxu0 }
 0x341   : > { %v4604_v42 = vpop.f32.mrb[15].mxu0  ;;  %v6413_v5 = vld [vmem:[%s5601_s8] sm:$0x7f] }
 0x342   : > { %v4605_v54 = vadd.f32 %v4604_v42, %v4603_v31  ;;  %v2566_v31 = vrot.slane %v6413_v5, %v5837_v7  ;;  %v2582_v42 = vrot.slane %v6413_v5, %v5840_v8 }
 0x344   : > { %v2310_v25 = vadd.f32 %v4605_v54, %v2240_v41  ;;  %v5445_v41 = vld [vmem:[%s5611_s15 + $0x168] ss:$28 sps:$4 sm:$0xff]   ;;  %v2570_v54 = vrot.slane %v6413_v5, %v5846_v10 }
 0x346   : > { %v2380_v61 = vadd.f32 %v2379_v53, %v2310_v25  ;;  %v5446_v53 = vld [vmem:[%s5611_s15 + $0x1a0] ss:$28 sps:$4 sm:$0xff]  }
 0x348   : > { %v6342_v39 = vmax.f32 %v2380_v61, 0.0 }
 0x34a   : > { %3852 = vmatmul.mubr.msk.f32.vlgmr.msra.gmra.mrb[16].mxu1 %vm6894_vm1, %v6342_v39  ;;  %3854 = vmatmul.mubr.msk.f32.vlgmr.msra.gmra.mrb[16].mxu0 %vm6895_vm5, %v6342_v39 }
 0x34b   : > { %5054 = vmatpush1.bf16.msra.mxu1 %v5393_v30  ;;  %5098 = vmatpush1.bf16.msra.mxu0 %v5396_v24 }
 0x34c   : > { %5056 = vmatprep.subr.bf16.mxu1 %v5397_v18  ;;  %5100 = vmatprep.subr.bf16.mxu0 %v5400_v11  ;;  %v2586_v11 = vrot.slane %v6413_v5, %v5855_v14 }
 0x34d   : > { %2736 = vmatprep.mubr.f32.mxu1 %v5541_v55  ;;  %2986 = vmatprep.mubr.f32.mxu0 %v5541_v55 }
 0x34f   : > { %5058 = vmatpush1.bf16.msra.mxu1 %v5399_v34  ;;  %5102 = vmatpush1.bf16.msra.mxu0 %v5402_v33 }
 0x350   : > { %5060 = vmatprep.subr.bf16.mxu1 %v5403_v32  ;;  %5104 = vmatprep.subr.bf16.mxu0 %v5406_v27 }
 0x353   : > { %5062 = vmatpush1.bf16.msra.mxu1 %v5405_v9  ;;  %5106 = vmatpush1.bf16.msra.mxu0 %v5408_v58 }
 0x354   : > { %5064 = vmatprep.subr.bf16.mxu1 %v5409_v44  ;;  %5108 = vmatprep.subr.bf16.mxu0 %v5412_v16 }
 0x357   : > { %5066 = vmatpush1.bf16.msra.mxu1 %v5411_v51  ;;  %5110 = vmatpush1.bf16.msra.mxu0 %v5414_v6 }
 0x358   : > { %5083 = vmatprep.subr.bf16.mxu1 %v5542_v4  ;;  %5128 = vmatprep.subr.bf16.mxu0 %v5415_v3 }
 0x35a   : > { %3853 = vmatmul.mubr.msk.f32.vlgmr.msra.gmra.mrb[18].mxu1 %vm6896_vm11, %v6342_v39  ;;  %3857 = vmatmul.mubr.msk.f32.vlgmr.msra.gmra.mrb[18].mxu0 %vm6897_vm2, %v6342_v39 }
 0x35b   : > { %5085 = vmatpush3.bf16.msra.mxu1 %v5418_v57  ;;  %5130 = vmatpush1.bf16.msra.mxu0 %v5417_v62  ;;  %v2574_v57 = vrot.slane %v6413_v5, %v5893_v38 }
 0x35c   : > { %5086 = vmatprep.subr.bf16.mxu1 %v5542_v4  ;;  %5132 = vmatprep.subr.bf16.mxu0 %v5419_v52  ;;  %v2578_v52 = vrot.slane %v6413_v5, %v5898_v40 }
 0x35d   : > { %4695 = vmatprep.mubr.msk.f32.mxu1 %vm6892_vm14, %v5541_v55  ;;  %3128 = vmatprep.mubr.f32.mxu0 %v5541_v55 }
 0x35f   : > { %5088 = vmatpush3.bf16.msra.mxu1 %v5422_v23  ;;  %5134 = vmatpush1.bf16.msra.mxu0 %v5421_v45 }
 0x360   : > { %5089 = vmatprep.subr.bf16.mxu1 %v5542_v4  ;;  %5136 = vmatprep.subr.bf16.mxu0 %v5423_v50 }
 0x363   : > { %5091 = vmatpush3.bf16.msra.mxu1 %v5426_v12  ;;  %5138 = vmatpush1.bf16.msra.mxu0 %v5425_v37 }
 0x364   : > { %5092 = vmatprep.subr.bf16.mxu1 %v5542_v4  ;;  %5140 = vmatprep.subr.bf16.mxu0 %v5427_v21 }
 0x367   : > { %5094 = vmatpush3.bf16.msra.mxu1 %v5430_v47  ;;  %5142 = vmatpush1.bf16.msra.mxu0 %v5429_v0 }
 0x368   : > { %5112 = vmatprep.subr.bf16.mxu1 %v5431_v22 }
 0x36a   : > { %4696 = vmatmul.mubr.msk.f32.vlgmr.msra.gmra.mrb[20].mxu1 %vm6898_vm4, %v6342_v39  ;;  %3859 = vmatmul.mubr.msk.f32.vlgmr.msra.gmra.mrb[20].mxu0 %vm6899_vm8, %v6342_v39 }
 0x36b   : > { %5114 = vmatpush1.bf16.msra.mxu1 %v5433_v26  ;;  %3057 = vmatprep.mubr.f32.mxu1 %v5541_v55 }
 0x36c   : > { %5116 = vmatprep.subr.bf16.mxu1 %v5434_v1 }
 0x36f   : > { %5118 = vmatpush1.bf16.msra.mxu1 %v5436_v59 }
 0x370   : > { %5120 = vmatprep.subr.bf16.mxu1 %v5437_v15 }
 0x373   : > { %5122 = vmatpush1.bf16.msra.mxu1 %v5439_v46 }
 0x374   : > { %5124 = vmatprep.subr.bf16.mxu1 %v5440_v60 }
 0x377   : > { %5126 = vmatpush1.bf16.msra.mxu1 %v5442_v35 }
 0x378   : > { %5143 = vmatprep.subr.bf16.mxu1 %v5542_v4 }
 0x37a   : > { %3858 = vmatmul.mubr.msk.f32.vlgmr.msra.gmra.mrb[22].mxu1 %vm6900_vm9, %v6342_v39 }
 0x37b   : > { %5145 = vmatpush3.bf16.msra.mxu1 %v5443_v43  ;;  %4714 = vmatprep.mubr.msk.f32.mxu1 %vm6892_vm14, %v5541_v55 }
 0x37c   : > { %5146 = vmatprep.subr.bf16.mxu1 %v5542_v4 }
 0x37f   : > { %5148 = vmatpush3.bf16.msra.mxu1 %v5444_v17 }
 0x380   : > { %5149 = vmatprep.subr.bf16.mxu1 %v5542_v4 }
 0x383   : > { %5151 = vmatpush3.bf16.msra.mxu1 %v5445_v41 }
 0x384   : > { %5152 = vmatprep.subr.bf16.mxu1 %v5542_v4 }
 0x387   : > { %5154 = vmatpush3.bf16.msra.mxu1 %v5446_v53 }
 0x38a   : > { %4715 = vmatmul.mubr.msk.f32.vlgmr.msra.gmra.mrb[24].mxu1 %vm6901_vm3, %v6342_v39 }
 0x41d   : > { %v2667_v25 = vpop.f32.mrb[16].mxu1  ;;  %v2809_v61 = vpop.f32.mrb[16].mxu0 }
 0x41e   : > { %v6421_v30 = vadd.f32 %v2667_v25, %v2566_v31  ;;  %v6423_v4 = vadd.f32 %v2809_v61, %v2582_v42  ;;  %v2669_v24 = vpop.f32.mrb[17].mxu1  ;;  %v2811_v18 = vpop.f32.mrb[17].mxu0 }
 0x41f   : > { %v6425_v39 = vadd.f32 %v2669_v24, %v2570_v54  ;;  %v6445_v58 = vadd.f32 %v2811_v18, %v2586_v11 }
 0x420   : > { %vm3205_vm6 = vcmp.lt.f32.partialorder %v6421_v30, 0.0  ;;  %v3219_v34 = vsub.f32 0.0, %v6421_v30  ;;  %vm3209_vm10 = vcmp.lt.f32.partialorder %v6423_v4, 0.0  ;;  %v3223_v33 = vsub.f32 0.0, %v6423_v4 }
 0x421   : > { %v3220_v32 = vsub.f32 0.0, %v6425_v39  ;;  %vm3206_vm13 = vcmp.lt.f32.partialorder %v6425_v39, 0.0  ;;  %vm6870_vm14 = vcmp.lt.f32.partialorder %v6445_v58, 0.0  ;;  %v3224_v3 = vsub.f32 0.0, %v6445_v58 }
 0x422   : > { %v6437_v27 = vsel %vm3205_vm6, %v3219_v34, %v6421_v30  ;;  %v6442_v9 = vsel %vm3209_vm10, %v3223_v33, %v6423_v4  ;;  %v6603_v42 = vsel %vm3209_vm10, -1.0, %v5545_v63 }
 0x423   : > { %5489 = vrcp.f32 %v6437_v27  ;;  %v3282_v44 = vadd.f32 1.0, %v6437_v27  ;;  %v3286_v16 = vadd.f32 1.0, %v6442_v9  ;;  %v6454_v51 = vsel %vm3206_vm13, %v3220_v32, %v6425_v39 }
 0x424   : > { %5491 = vrcp.f32 %v6442_v9  ;;  %v3283_v6 = vadd.f32 1.0, %v6454_v51  ;;  %vm3233_vm7 = vcmp.gt.f32.partialorder %v6437_v27, 2.4142137  ;;  %v6464_v62 = vsel %vm6870_vm14, %v3224_v3, %v6445_v58 }
 0x425   : > { %5493 = vrcp.f32 %v3282_v44  ;;  %vm3240_vm1 = vcmp.gt.f32.partialorder %v6437_v27, 0.41421357  ;;  %vm3247_vm5 = vmxor %vm3233_vm7, %vm5544_vm15  ;;  %v3287_v45 = vadd.f32 1.0, %v6464_v62  ;;  %vm3237_vm11 = vcmp.gt.f32.partialorder %v6442_v9, 2.4142137 }
 0x426   : > { %5495 = vrcp.f32 %v3286_v16  ;;  %vm6479_vm2 = vmand %vm3240_vm1, %vm3247_vm5  ;;  %v3861_v26 = vadd.f32 -1.0, %v6437_v27  ;;  %vm3234_vm4 = vcmp.gt.f32.partialorder %v6454_v51, 2.4142137  ;;  %vm3244_vm8 = vcmp.gt.f32.partialorder %v6442_v9, 0.41421357 }
 0x427   : > { %5497 = vrcp.f32 %v6454_v51  ;;  %vm6495_vm9 = vmxor %vm3237_vm11, %vm5544_vm15  ;;  %v3865_v46 = vadd.f32 -1.0, %v6442_v9  ;;  %v3317_v17 = vsel %vm6479_vm2, 0.7853982, %v5541_v55  ;;  %vm3241_vm1 = vcmp.gt.f32.partialorder %v6454_v51, 0.41421357 }
 0x428   : > { %5499 = vrcp.f32 %v3283_v6  ;;  %vm6509_vm5 = vmxor %vm3234_vm4, %vm5544_vm15  ;;  %v3862_v54 = vadd.f32 -1.0, %v6454_v51  ;;  %vm3238_vm0 = vcmp.gt.f32.partialorder %v6464_v62, 2.4142137  ;;  %v3213_v3 = vsel %vm3206_vm13, -1.0, %v5545_v63 }
 0x429   : > { %5501 = vrcp.f32 %v6464_v62  ;;  %vm6526_vm12 = vmand %vm3244_vm8, %vm6495_vm9  ;;  %vm3245_vm8 = vcmp.gt.f32.partialorder %v6464_v62, 0.41421357 }
 0x42a   : > { %5503 = vrcp.f32 %v3287_v45  ;;  %vm6574_vm9 = vmxor %vm3238_vm0, %vm5544_vm15  ;;  %v3321_v4 = vsel %vm6526_vm12, 0.7853982, %v5541_v55 }
 0x42d   : > { %v2738_v23 = vpop.f32.mrb[18].mxu1  ;;  %v6477_v50 = vpop.f32.mrb[18].mxu0 }
 0x42e   : > { %v5490_v37 = vpop.eup %5489  ;;  %v6483_v21 = vadd.f32 %v2738_v23, %v2574_v57  ;;  %v2740_v0 = vpop.f32.mrb[19].mxu1 }
 0x42f   : > { %v6485_v47 = vpop.f32.mrb[19].mxu0  ;;  %v5492_v22 = vpop.eup %5491  ;;  %v6489_v1 = vadd.f32 %v2740_v0, %v2578_v52  ;;  %v3262_v53 = vmul.f32 -1.0, %v5490_v37 }
 0x430   : > { %v5494_v59 = vpop.eup %5493  ;;  %vm3207_vm3 = vcmp.lt.f32.partialorder %v6483_v21, 0.0  ;;  %v3221_v60 = vsub.f32 0.0, %v6483_v21  ;;  %v3270_v11 = vmul.f32 -1.0, %v5492_v22 }
 0x431   : > { %v5496_v35 = vpop.eup %5495  ;;  %v3290_v43 = vmul.f32 %v5494_v59, %v3861_v26  ;;  %vm3208_vm14 = vcmp.lt.f32.partialorder %v6489_v1, 0.0  ;;  %v3222_v44 = vsub.f32 0.0, %v6489_v1  ;;  %v3866_v26 = vadd.f32 -1.0, %v6464_v62 }
 0x432   : > { %v5498_v41 = vpop.eup %5497  ;;  %v3298_v31 = vmul.f32 %v5496_v35, %v3865_v46  ;;  %v6517_v25 = vsel %vm3207_vm3, %v3221_v60, %v6483_v21  ;;  %v2590_v35 = vrot.slane %v6413_v5, %v5949_v2 }
 0x433   : > { %v5500_v61 = vpop.eup %5499  ;;  %v3303_v24 = vsel %vm6479_vm2, %v3290_v43, %v6437_v27  ;;  %vm6552_vm2 = vmand %vm3241_vm1, %vm6509_vm5  ;;  %v3264_v57 = vmul.f32 -1.0, %v5498_v41  ;;  %v3284_v52 = vadd.f32 1.0, %v6517_v25  ;;  %5505 = vrcp.f32 %v6517_v25 }
 0x434   : > { %v6534_v34 = vsel %vm3233_vm7, %v3262_v53, %v3303_v24  ;;  %v3307_v33 = vsel %vm6526_vm12, %v3298_v31, %v6442_v9  ;;  %v3292_v32 = vmul.f32 %v5500_v61, %v3862_v54  ;;  %v5502_v37 = vpop.eup %5501  ;;  %v6587_v60 = vsel %vm3208_vm14, %v3222_v44, %v6489_v1 }
 0x435   : > { %v6542_v16 = vmul.f32 %v6534_v34, %v6534_v34  ;;  %v6546_v6 = vsel %vm3237_vm11, %v3270_v11, %v3307_v33  ;;  %5507 = vrcp.f32 %v3284_v52  ;;  %v5504_v59 = vpop.eup %5503  ;;  %v6594_v43 = vsel %vm3205_vm6, -1.0, %v5545_v63  ;;  %vm6610_vm6 = vmand %vm3245_vm8, %vm6574_vm9 }
 0x436   : > { %v6559_v45 = vmul.f32 %v6546_v6, %v6546_v6  ;;  %v3304_v23 = vsel %vm6552_vm2, %v3292_v32, %v6454_v51  ;;  %v6598_v41 = vsel %vm3233_vm7, 1.5707964, %v3317_v17  ;;  %v3300_v31 = vmul.f32 %v5504_v59, %v3866_v26 }
 0x437   : > { %v3338_v12 = vmul.f32 0.080537446, %v6542_v16  ;;  %v6569_v0 = vsel %vm3234_vm4, %v3264_v57, %v3304_v23  ;;  %v3272_v30 = vmul.f32 -1.0, %v5502_v37  ;;  %v3285_v24 = vadd.f32 1.0, %v6587_v60 }
 0x438   : > { %v3342_v15 = vmul.f32 0.080537446, %v6559_v45  ;;  %v6582_v46 = vmul.f32 %v6569_v0, %v6569_v0  ;;  %v3308_v17 = vsel %vm6610_vm6, %v3300_v31, %v6464_v62  ;;  %5509 = vrcp.f32 %v6587_v60 }
 0x439   : > { %v3868_v53 = vadd.f32 -0.13877685, %v3338_v12  ;;  %v6625_v32 = vsel %vm3238_vm0, %v3272_v30, %v3308_v17  ;;  %vm3235_vm12 = vcmp.gt.f32.partialorder %v6517_v25, 2.4142137  ;;  %5511 = vrcp.f32 %v3285_v24 }
 0x43a   : > { %v3872_v54 = vadd.f32 -0.13877685, %v3342_v15  ;;  %v3339_v61 = vmul.f32 0.080537446, %v6582_v46  ;;  %v6630_v18 = vmul.f32 %v6625_v32, %v6625_v32  ;;  %v3328_v23 = vsel %vm3237_vm11, 1.5707964, %v3321_v4  ;;  %vm3249_vm7 = vmxor %vm3235_vm12, %vm5544_vm15 }
 0x43b   : > { %v3352_v27 = vmul.f32 %v3868_v53, %v6542_v16  ;;  %v3318_v53 = vsel %vm6552_vm2, 0.7853982, %v5541_v55  ;;  %vm3242_vm10 = vcmp.gt.f32.partialorder %v6517_v25, 0.41421357  ;;  %vm3236_vm13 = vcmp.gt.f32.partialorder %v6587_v60, 2.4142137 }
 0x43c   : > { %v3356_v11 = vmul.f32 %v3872_v54, %v6559_v45  ;;  %v3869_v33 = vadd.f32 -0.13877685, %v3339_v61  ;;  %v3343_v31 = vmul.f32 0.080537446, %v6630_v18  ;;  %vm6666_vm1 = vmand %vm3242_vm10, %vm3249_vm7  ;;  %vm3243_vm5 = vcmp.gt.f32.partialorder %v6587_v60, 0.41421357 }
 0x43d   : > { %v3359_v44 = vadd.f32 0.19977711, %v3352_v27  ;;  %v2880_v57 = vpop.f32.mrb[20].mxu1  ;;  %v6633_v52 = vpop.f32.mrb[20].mxu0  ;;  %vm3250_vm2 = vmxor %vm3236_vm13, %vm5544_vm15  ;;  %vm6920_vm9 = vcmp.lt.f32.partialorder %v6445_v58, 0.0 }
 0x43e   : > { %v3363_v37 = vadd.f32 0.19977711, %v3356_v11  ;;  %v3353_v12 = vmul.f32 %v3869_v33, %v6582_v46  ;;  %v6638_v22 = vadd.f32 %v2880_v57, %v2590_v35  ;;  %v4697_v26 = vpop.f32.mrb[21].mxu1  ;;  %v6640_v59 = vpop.f32.mrb[21].mxu0  ;;  %v3863_v35 = vadd.f32 -1.0, %v6517_v25  ;;  %vm6703_vm8 = vmand %vm3243_vm5, %vm3250_vm2 }
 0x43f   : > { %v3366_v15 = vmul.f32 %v3359_v44, %v6542_v16  ;;  %v5506_v9 = vpop.eup %5505  ;;  %v3873_v17 = vadd.f32 -0.13877685, %v3343_v31  ;;  %v3322_v33 = vsel %vm6610_vm6, 0.7853982, %v5541_v55 }
 0x440   : > { %v3370_v54 = vmul.f32 %v3363_v37, %v6559_v45  ;;  %v3360_v61 = vadd.f32 0.19977711, %v3353_v12  ;;  %v3225_v30 = vsub.f32 0.0, %v6638_v22  ;;  %v5508_v27 = vpop.eup %5507  ;;  %vm3211_vm11 = vcmp.lt.f32.partialorder %v6638_v22, 0.0 }
 0x441   : > { %v3875_v4 = vadd.f32 -0.3333295, %v3366_v15  ;;  %v3294_v44 = vmul.f32 %v5508_v27, %v3863_v35  ;;  %v3357_v37 = vmul.f32 %v3873_v17, %v6630_v18  ;;  %v3266_v12 = vmul.f32 -1.0, %v5506_v9 }
 0x442   : > { %v3879_v24 = vadd.f32 -0.3333295, %v3370_v54  ;;  %v3367_v11 = vmul.f32 %v3360_v61, %v6582_v46  ;;  %v3329_v51 = vsel %vm3238_vm0, 1.5707964, %v3322_v33 }
 0x443   : > { %v3380_v57 = vmul.f32 %v3875_v4, %v6542_v16  ;;  %v3305_v5 = vsel %vm6666_vm1, %v3294_v44, %v6517_v25  ;;  %v6678_v16 = vsel %vm3211_vm11, %v3225_v30, %v6638_v22  ;;  %v3364_v54 = vadd.f32 0.19977711, %v3357_v37 }
 0x444   : > { %v3384_v26 = vmul.f32 %v3879_v24, %v6559_v45  ;;  %v3876_v15 = vadd.f32 -0.3333295, %v3367_v11  ;;  %v6683_v9 = vsel %vm3235_vm12, %v3266_v12, %v3305_v5  ;;  %v5510_v45 = vpop.eup %5509  ;;  %v3864_v30 = vadd.f32 -1.0, %v6587_v60 }
 0x445   : > { %v3387_v31 = vmul.f32 %v3380_v57, %v6534_v34  ;;  %v3333_v27 = vmul.f32 %v6683_v9, %v6683_v9  ;;  %v5512_v4 = vpop.eup %5511  ;;  %v3371_v24 = vmul.f32 %v3364_v54, %v6630_v18  ;;  %5513 = vrcp.f32 %v6678_v16 }
 0x446   : > { %v3391_v61 = vmul.f32 %v3384_v26, %v6546_v6  ;;  %v3381_v35 = vmul.f32 %v3876_v15, %v6582_v46  ;;  %v3288_v11 = vadd.f32 1.0, %v6678_v16  ;;  %v3296_v37 = vmul.f32 %v5512_v4, %v3864_v30 }
 0x447   : > { %v3394_v17 = vadd.f32 %v3387_v31, %v6534_v34  ;;  %v3340_v57 = vmul.f32 0.080537446, %v3333_v27  ;;  %v3880_v26 = vadd.f32 -0.3333295, %v3371_v24  ;;  %v3268_v34 = vmul.f32 -1.0, %v5510_v45 }
 0x448   : > { %v3398_v46 = vadd.f32 %v3391_v61, %v6546_v6  ;;  %v3388_v44 = vmul.f32 %v3381_v35, %v6569_v0  ;;  %5515 = vrcp.f32 %v3288_v11  ;;  %v3306_v6 = vsel %vm6703_vm8, %v3296_v37, %v6587_v60 }
 0x449   : > { %v3401_v12 = vadd.f32 %v3394_v17, %v6598_v41  ;;  %v3870_v54 = vadd.f32 -0.13877685, %v3340_v57  ;;  %v3325_v41 = vsel %vm3234_vm4, 1.5707964, %v3318_v53  ;;  %v3385_v35 = vmul.f32 %v3880_v26, %v6630_v18 }
 0x44a   : > { %v3405_v5 = vadd.f32 %v3398_v46, %v3328_v23  ;;  %v3395_v31 = vadd.f32 %v3388_v44, %v6569_v0  ;;  %v6717_v30 = vsel %vm3236_vm13, %v3268_v34, %v3306_v6  ;;  %vm6921_vm4 = vcmask 1041408  }
 0x44b   : > { %v3408_v61 = vmul.f32 %v3401_v12, %v6594_v43  ;;  %v3354_v0 = vmul.f32 %v3870_v54, %v3333_v27  ;;  %v3334_v4 = vmul.f32 %v6717_v30, %v6717_v30  ;;  %v3217_v43 = vsel %vm6920_vm9, -1.0, %v5545_v63  ;;  %vm6922_vm10 = vmmov %vm6921_vm4 }
 0x44c   : > { %v3412_v23 = vmul.f32 %v3405_v5, %v6603_v42  ;;  %v3402_v45 = vadd.f32 %v3395_v31, %v3325_v41  ;;  %v3392_v18 = vmul.f32 %v3385_v35, %v6625_v32  ;;  %vm3239_vm6 = vcmp.gt.f32.partialorder %v6678_v16, 2.4142137 }
 0x44d   : > { %v3415_v17 = vmul.f32 0.636, %v3408_v61  ;;  %v6728_v53 = vpop.f32.mrb[22].mxu1  ;;  %v3361_v11 = vadd.f32 0.19977711, %v3354_v0  ;;  %v3867_v5 = vadd.f32 -1.0, %v6678_v16  ;;  %vm3253_vm7 = vmxor %vm3239_vm6, %vm5544_vm15 }
 0x44e   : > { %v6730_v24 = vmul.f32 0.636, %v3412_v23  ;;  %v3409_v42 = vmul.f32 %v3402_v45, %v3213_v3  ;;  %v3341_v46 = vmul.f32 0.080537446, %v3334_v4  ;;  %v3399_v37 = vadd.f32 %v3392_v18, %v6625_v32  ;;  %v6735_v58 = vpop.f32.mrb[23].mxu1  ;;  %vm6925_vm15 = vmmov %vm6921_vm4 }
 0x44f   : > { %v3422_v44 = vmul.f32 1.442695, %v3415_v17  ;;  %v3500_v57 = vsel %vm6921_vm4, %v3415_v17, 0.0  ;;  %v3368_v12 = vmul.f32 %v3361_v11, %v3333_v27  ;;  %v5514_v34 = vpop.eup %5513  ;;  %vm3246_vm0 = vcmp.gt.f32.partialorder %v6678_v16, 0.41421357 }
 0x450   : > { %v3430_v62 = vmul.f32 1.442695, %v6730_v24  ;;  %v3416_v33 = vmul.f32 0.636, %v3409_v42  ;;  %v3871_v26 = vadd.f32 -0.13877685, %v3341_v46  ;;  %v3406_v3 = vadd.f32 %v3399_v37, %v3329_v51  ;;  %vm6751_vm5 = vmand %vm3246_vm0, %vm3253_vm7 }
 0x451   : > { %5517 = vpow2.f32 %v3422_v44  ;;  %v3877_v54 = vadd.f32 -0.3333295, %v3368_v12  ;;  %v6745_v45 = vld [vmem:[%s5601_s8 + $0x7] sm:$0x7f]  ;;  %v3274_v42 = vmul.f32 -1.0, %v5514_v34  ;;  %v3215_v60 = vsel %vm3208_vm14, -1.0, %v5545_v63 }
 0x452   : > { %5519 = vpow2.f32 %v3430_v62  ;;  %v3424_v31 = vmul.f32 1.442695, %v3416_v33  ;;  %v3501_v32 = vsel %vm6922_vm10, %v3416_v33, 0.0  ;;  %v5516_v6 = vpop.eup %5515  ;;  %v3413_v61 = vmul.f32 %v3406_v3, %v3217_v43 }
 0x453   : > { %v3355_v41 = vmul.f32 %v3871_v26, %v3334_v4  ;;  %v3502_v35 = vadd.f32 %v3501_v32, %v3500_v57  ;;  %v3382_v23 = vmul.f32 %v3877_v54, %v3333_v27  ;;  %v3302_v0 = vmul.f32 %v5516_v6, %v3867_v5 }
 0x454   : > { %5521 = vpow2.f32 %v3424_v31  ;;  %v6747_v17 = vmul.f32 0.636, %v3413_v61  ;;  %v3319_v43 = vsel %vm6666_vm1, 0.7853982, %v5541_v55  ;;  %v2890_v44 = vrot.slane %v6745_v45, %v5837_v7 }
 0x455   : > { %v3362_v51 = vadd.f32 0.19977711, %v3355_v41  ;;  %v3389_v11 = vmul.f32 %v3382_v23, %v6683_v9  ;;  %v3309_v27 = vsel %vm6751_vm5, %v3302_v0, %v6678_v16  ;;  %v3326_v39 = vsel %vm3235_vm12, 1.5707964, %v3319_v43 }
 0x456   : > { %v3432_v46 = vmul.f32 1.442695, %v6747_v17  ;;  %v3316_v37 = vsel %vm3239_vm6, %v3274_v42, %v3309_v27  ;;  %v2906_v26 = vrot.slane %v6745_v45, %v5840_v8  ;;  %v2894_v3 = vrot.slane %v6745_v45, %v5846_v10 }
 0x457   : > { %v3369_v57 = vmul.f32 %v3362_v51, %v3334_v4  ;;  %v3396_v62 = vadd.f32 %v3389_v11, %v6683_v9  ;;  %v3337_v33 = vmul.f32 %v3316_v37, %v3316_v37  ;;  %v3214_v31 = vsel %vm3207_vm3, -1.0, %v5545_v63  ;;  %vm6926_vm3 = vmmov %vm6921_vm4 }
 0x458   : > { %5523 = vpow2.f32 %v3432_v46  ;;  %v2989_v9 = vadd.f32 %v6477_v50, %v2890_v44  ;;  %v3320_v8 = vsel %vm6703_vm8, 0.7853982, %v5541_v55  ;;  %v3131_v41 = vadd.f32 %v6633_v52, %v2906_v26  ;;  %vm6927_vm14 = vmmov %vm6926_vm3 }
 0x459   : > { %v3878_v12 = vadd.f32 -0.3333295, %v3369_v57  ;;  %v3403_v34 = vadd.f32 %v3396_v62, %v3326_v39  ;;  %v3344_v7 = vmul.f32 0.080537446, %v3337_v33  ;;  %v2991_v51 = vadd.f32 %v6485_v47, %v2894_v3  ;;  %vm6928_vm12 = vmmov %vm6926_vm3 }
 0x45a   : > { %v3327_v15 = vsel %vm3236_vm13, 1.5707964, %v3320_v8  ;;  %v2910_v46 = vrot.slane %v6745_v45, %v5855_v14  ;;  %v3323_v1 = vsel %vm6751_vm5, 0.7853982, %v5541_v55  ;;  %v3509_v18 = vsel %vm6928_vm12, %v6747_v17, 0.0  ;;  %vm6930_vm13 = vmmov %vm6926_vm3 }
 0x45b   : > { %v5518_v5 = vpop.eup %5517  ;;  %v3383_v32 = vmul.f32 %v3878_v12, %v3334_v4  ;;  %v3410_v25 = vmul.f32 %v3403_v34, %v3214_v31  ;;  %v3874_v61 = vadd.f32 -0.13877685, %v3344_v7  ;;  %v2902_v16 = vrot.slane %v6745_v45, %v5898_v40 }
 0x45c   : > { %v5520_v54 = vpop.eup %5519  ;;  %v3436_v6 = vmul.f32 %v5518_v5, %v6236_v19  ;;  %v3133_v34 = vadd.f32 %v6640_v59, %v2910_v46  ;;  %v2898_v59 = vrot.slane %v6745_v45, %v5893_v38  ;;  %vm6929_vm1 = vcmask 123904  }
 0x45d   : > { %v3390_v10 = vmul.f32 %v3383_v32, %v6717_v30  ;;  %v3440_v23 = vmul.f32 %v5520_v54, %v6243_v49  ;;  %v6785_v21 = vpop.f32.mrb[24].mxu1  ;;  %v3417_v50 = vmul.f32 0.636, %v3410_v25  ;;  %v3358_v42 = vmul.f32 %v3874_v61, %v3337_v33 }
 0x45e   : > { %v5522_v0 = vpop.eup %5521  ;;  %v3443_v4 = vadd.f32 %v3436_v6, %v2989_v9  ;;  %v4716_v19 = vpop.f32.mrb[25].mxu1  ;;  %v3330_v6 = vsel %vm3239_vm6, 1.5707964, %v3323_v1  ;;  %v3060_v38 = vadd.f32 %v6728_v53, %v2898_v59  ;;  %v2914_v40 = vrot.slane %v6745_v45, %v5949_v2 }
 0x45f   : > { %v3397_v43 = vadd.f32 %v3390_v10, %v6717_v30  ;;  %v3437_v11 = vmul.f32 %v5522_v0, %v6248_v48  ;;  %v6792_v27 = vadd.f32 %v3440_v23, %v3131_v41  ;;  %v3426_v52 = vmul.f32 1.442695, %v3417_v50 }
 0x460   : > { %v3365_v49 = vadd.f32 0.19977711, %v3358_v42  ;;  %v3503_v44 = vsel %vm6925_vm15, %v3417_v50, 0.0  ;;  %v3218_v10 = vsel %vm3211_vm11, -1.0, %v5545_v63  ;;  %vm3494_vm11 = vcmask 1043458  }
 0x461   : > { %v3404_v57 = vadd.f32 %v3397_v43, %v3327_v15  ;;  %v3444_v47 = vadd.f32 %v3437_v11, %v2991_v51  ;;  %v3504_v62 = vadd.f32 %v3503_v44, %v3502_v35  ;;  %5525 = vpow2.f32 %v3426_v52  ;;  %vm3495_vm2 = vmor %vm3494_vm11, %vm6930_vm13 }
 0x462   : > { %v3372_v30 = vmul.f32 %v3365_v49, %v3337_v33  ;;  %v5524_v39 = vpop.eup %5523  ;;  %v3062_v51 = vadd.f32 %v6735_v58, %v2902_v16  ;;  %v3202_v58 = vadd.f32 %v6785_v21, %v2914_v40  ;;  %vm3496_vm8 = vcmask 128004   ;;  %v3499_v21 = vld [vmem:[#allocation3] sm:$0x3] }
 0x463   : > { %v3411_v48 = vmul.f32 %v3404_v57, %v3215_v60  ;;  %v3457_v12 = vcombine.low %v3443_v4, %v3444_v47  ;;  %v3441_v3 = vmul.f32 %v5524_v39, %v6259_v13  ;;  %v3507_v13 = vsel %vm6927_vm14, %v6730_v24, 0.0  ;;  %vm6835_vm9 = vmor %vm3496_vm8, %vm3495_vm2 }
 0x464   : > { %v3881_v26 = vadd.f32 -0.3333295, %v3372_v30  ;;  %vm3533_vm4 = vcmask 1024  }
 0x465   : > { %v3418_v14 = vmul.f32 0.636, %v3411_v48  ;;  %v3448_v5 = vadd.f32 %v3441_v3, %v3133_v34 }
 0x466   : > { %v3386_v7 = vmul.f32 %v3881_v26, %v3337_v33 }
 0x467   : > { %v3428_v31 = vmul.f32 1.442695, %v3418_v14  ;;  %v3505_v35 = vsel %vm6926_vm3, %v3418_v14, 0.0  ;;  %v3474_v32 = vcombine.low %v6792_v27, %v3448_v5 }
 0x468   : > { %v3393_v9 = vmul.f32 %v3386_v7, %v3316_v37  ;;  %v3506_v54 = vadd.f32 %v3505_v35, %v3504_v62 }
 0x469   : > { %5527 = vpow2.f32 %v3428_v31 }
 0x46a   : > { %v3400_v33 = vadd.f32 %v3393_v9, %v3316_v37  ;;  %v3508_v25 = vadd.f32 %v3507_v13, %v3506_v54 }
 0x46b   : > { %v5526_v55 = vpop.eup %5525 }
 0x46c   : > { %v3407_v8 = vadd.f32 %v3400_v33, %v3330_v6  ;;  %v3510_v61 = vadd.f32 %v3509_v18, %v3508_v25  ;;  %v3438_v41 = vmul.f32 %v5526_v55, %v6286_v28  ;;  %v3465_v28 = vrot.slane %v3457_v12, %v5635_v20 }
 0x46e   : > { %v3414_v24 = vmul.f32 %v3407_v8, %v3218_v10  ;;  %v3445_v37 = vadd.f32 %v3438_v41, %v3060_v38 }
 0x470   : > { %v3421_v23 = vmul.f32 0.636, %v3414_v24 }
 0x472   : > { %v3434_v0 = vmul.f32 1.442695, %v3421_v23  ;;  %v3512_v17 = vsel %vm6929_vm1, %v3421_v23, 0.0 }
 0x473   : > { %v5528_v50 = vpop.eup %5527  ;;  %v3513_v4 = vadd.f32 %v3512_v17, %v3510_v61 }
 0x474   : > { %5529 = vpow2.f32 %v3434_v0  ;;  %v3439_v63 = vmul.f32 %v5528_v50, %v6298_v29 }
 0x475   : > { %3514 = vadd.xlane.f32.xlu0 %v3513_v4 }
 0x476   : > { %v3446_v22 = vadd.f32 %v3439_v63, %v3062_v51 }
 0x478   : > { %v3458_v53 = vcombine.low %v3445_v37, %v3446_v22 }
 0x479   : > { %3529 = vadd.xlane.f32.xlu0 %v6294_v56  ;;  %v3481_v56 = vrot.slane %v3474_v32, %v5635_v20 }
 0x47a   : > { %v3472_v42 = vrot.slane %v3458_v53, %v5635_v20 }
 0x47c   : > { %v3473_v19 = vcombine.low %v3465_v28, %v3472_v42 }
 0x47e   : > { %v5530_v15 = vpop.eup %5529  ;;  %3492 = vst [vmem:[#allocation2] sm:$0xff] %v3473_v19 }
 0x47f   : > { %v3442_v29 = vmul.f32 %v5530_v15, %v6314_v36 }
 0x481   : > { %v3449_v43 = vadd.f32 %v3442_v29, %v3202_v58 }
 0x483   : > { %v3488_v11 = vrot.slane %v3449_v43, %v5635_v20 }
 0x485   : > { %v3489_v2 = vcombine.low %v3481_v56, %v3488_v11  ;;  %v3539_v46 = vld [vmem:[#allocation2] sm:$0xff] (!%p3882_p5) }
 0x486   : > { %3541 = vst [vmem:[%s6861_s5] sm:$0xff] (!%p3882_p5), %v3539_v46 }
 0x487   : > { %3498 = vst.msk [vmem:[#allocation2 + $0x8] sm:$0x3f] %vm6835_vm9, %v3489_v2 }
 0x48e   : > { %v3540_v20 = vld [vmem:[#allocation2 + $0x8] sm:$0x3f] (!%p3882_p5) }
 0x48f   : > { %3542 = vst.msk [vmem:[%s6861_s5 + $0x8] sm:$0x3f] (!%p3882_p5), %vm6835_vm9, %v3540_v20 }
 0x502   : > { %v3515_v45 = vpop.xlane.xlu0 %3514 }
 0x505   : > { %3538 = sbr.rel (%p3882_p5) target bundleno = 1300 (0x514), region = 48 }
 0x506   : > { %v3530_v52 = vpop.xlane.xlu0 %3529 }
 0x507   : > { %v3531_v36 = vadd.f32 %v3530_v52, %v3515_v45 }
 0x509   : > { %v3532_v49 = vadd.f32 %v3531_v36, %v3499_v21 }
 0x50b   : > { %3534 = vst.msk [vmem:[#allocation3] sm:$0x3] %vm3533_vm4, %v3532_v49 }
 0x512   : > { %v3543_v44 = vld [vmem:[#allocation3] sm:$0x3] }
 0x513   : > { %3544 = vst.msk [vmem:[%s6862_s6] sm:$0x3] %vm3533_vm4, %v3543_v44 }
 0x514 PF: > { %s17_s21 = sadd.s32 1, %s5537_s21  }
 0x515   : > { %p14_p6 = scmp.ge.s32.totalorder %s17_s21, 22  }
 0x517   :  { %16 = sbr.rel (!%p14_p6) target bundleno = 1 (0x1), region = 99 }

</bundles_post_ra>
